<compile_context>
chip_gen: v5e
topology: v5e:2x2
jax: 0.10.0
libtpu: 0.0.40
codegen_flags: <defaults>
</compile_context>

<pallas_src>
import functools

import jax
import jax.numpy as jnp
from jax.experimental import pallas as pl
from jax.experimental.pallas import tpu as pltpu

LANE = 128
SUBLANE = 8


def _round_up(n, m):
    return ((n + m - 1) // m) * m


def _vae_kernel(x_ref,
                w0_ref, b0_ref,
                w1_ref, b1_ref,
                w2_ref, b2_ref,
                w3_ref, b3_ref,
                wh_ref, bh_ref,
                eps_ref,
                out_ref,
                *, lp):
    """Fused VAE forward for one batch tile (everything resident in VMEM).

    lp: lane-padded latent width (multiple of 128). out_ref is [Bt, 3*lp] and
    holds [ z | mu | log_var ] side by side (lane-dense, unmasked stores).
    """

    def dense(h, w_ref, b_ref):
        # bf16 (or f32) operands on the MXU, f32 accumulation, f32 bias add.
        return jnp.dot(h, w_ref[...], preferred_element_type=jnp.float32) + b_ref[...]

    # ----- encoder chain (ReLU in f32, re-cast to weight dtype for the MXU)
    h = jnp.maximum(dense(x_ref[...], w0_ref, b0_ref), 0.0)
    h = jnp.maximum(dense(h.astype(w1_ref.dtype), w1_ref, b1_ref), 0.0)
    h = jnp.maximum(dense(h.astype(w2_ref.dtype), w2_ref, b2_ref), 0.0)
    h = jnp.maximum(dense(h.astype(w3_ref.dtype), w3_ref, b3_ref), 0.0)

    # ----- fused mu|log_var head: single [Bt,128] x [128, 2*lp] MXU call
    heads = dense(h.astype(wh_ref.dtype), wh_ref, bh_ref)   # [Bt, 2*lp] f32
    mu = heads[:, :lp]
    lv = heads[:, lp:]

    # ----- reparameterize (f32 elementwise; exp goes to the EUP)
    z = eps_ref[...] * jnp.exp(0.5 * lv) + mu

    # ----- lane-dense stores (128-aligned slices -> unmasked vst)
    out_ref[:, 0 * lp:1 * lp] = z.astype(out_ref.dtype)
    out_ref[:, 1 * lp:2 * lp] = mu.astype(out_ref.dtype)
    out_ref[:, 2 * lp:3 * lp] = lv.astype(out_ref.dtype)


def init_vae_params(key, input_dim, latent_dim, hidden_dim):
    """PyTorch-style uniform init. Weights stored [in, out] (= W.T of nn.Linear),
    biases [1, out], all f32 (the 'true' unpadded parameters)."""

    def linear(key, fan_in, fan_out):
        kw, kb = jax.random.split(key)
        bound = 1.0 / jnp.sqrt(fan_in)
        w = jax.random.uniform(kw, (fan_in, fan_out), jnp.float32, -bound, bound)
        b = jax.random.uniform(kb, (1, fan_out), jnp.float32, -bound, bound)
        return w, b

    keys = jax.random.split(key, 6)
    p = {}
    p["w0"], p["b0"] = linear(keys[0], input_dim, 128)          # Linear(input_dim, 128)
    p["w1"], p["b1"] = linear(keys[1], 128, hidden_dim)         # Linear(128, hidden_dim)
    p["w2"], p["b2"] = linear(keys[2], hidden_dim, hidden_dim)  # hidden_num-3 == 1 extra layer
    p["w3"], p["b3"] = linear(keys[3], hidden_dim, 128)         # Linear(hidden_dim, 128)
    p["wmu"], p["bmu"] = linear(keys[4], 128, latent_dim)       # hidtomu
    p["wlv"], p["blv"] = linear(keys[5], 128, latent_dim)       # hidtovar
    return p


def prepare_params(params, compute_dtype=jnp.bfloat16):
    """Zero-pad every feature axis to a multiple of 128 lanes, fuse the mu/logvar
    heads into one weight, and cast MXU operands to `compute_dtype`. Biases stay
    f32 (added after f32 accumulation). Zero padding is exact: padded columns
    produce 0 pre-activations which contribute nothing downstream."""
    input_dim = params["w0"].shape[0]
    hidden_dim = params["w1"].shape[1]
    latent_dim = params["wmu"].shape[1]
    dp = _round_up(input_dim, LANE)
    hp = _round_up(hidden_dim, LANE)
    lp = _round_up(latent_dim, LANE)

    def pad_w(w, rows, cols):
        r, c = w.shape
        return jnp.pad(w, ((0, rows - r), (0, cols - c)))

    def pad_b(b, cols):
        return jnp.pad(b, ((0, 0), (0, cols - b.shape[1])))

    k = {}
    k["w0"] = pad_w(params["w0"], dp, 128).astype(compute_dtype)
    k["b0"] = pad_b(params["b0"], 128).astype(jnp.float32)
    k["w1"] = pad_w(params["w1"], 128, hp).astype(compute_dtype)
    k["b1"] = pad_b(params["b1"], hp).astype(jnp.float32)
    k["w2"] = pad_w(params["w2"], hp, hp).astype(compute_dtype)
    k["b2"] = pad_b(params["b2"], hp).astype(jnp.float32)
    k["w3"] = pad_w(params["w3"], hp, 128).astype(compute_dtype)
    k["b3"] = pad_b(params["b3"], 128).astype(jnp.float32)
    # fused heads: [128, 2*lp] = [ wmu_pad | wlv_pad ]
    k["wh"] = jnp.concatenate(
        [pad_w(params["wmu"], 128, lp), pad_w(params["wlv"], 128, lp)], axis=1
    ).astype(compute_dtype)
    k["bh"] = jnp.concatenate(
        [pad_b(params["bmu"], lp), pad_b(params["blv"], lp)], axis=1
    ).astype(jnp.float32)

    dims = dict(input_dim=input_dim, hidden_dim=hidden_dim, latent_dim=latent_dim,
                dp=dp, hp=hp, lp=lp)
    return k, dims


def _choose_batch_tile(batch):
    """Multiple of 8 sublanes, >=2 grid steps when possible (pipelining + megacore)."""
    if batch <= SUBLANE:
        return batch
    for tile in (1024, 512, 256, 128, 64, 32, 16, 8):
        if batch % tile == 0 and batch // tile >= 2:
            return tile
    return batch


def vae_forward(x, params, eps, *, batch_tile=None, compute_dtype=jnp.bfloat16):
    """Fused VAE forward. Returns (z, mu, log_var), each [B, latent_dim] f32."""
    batch, input_dim = x.shape
    kparams, dims = prepare_params(params, compute_dtype=compute_dtype)
    dp, hp, lp = dims["dp"], dims["hp"], dims["lp"]
    latent_dim = dims["latent_dim"]

    if batch_tile is None:
        batch_tile = _choose_batch_tile(batch)
    assert batch % batch_tile == 0, "batch must be divisible by batch_tile"
    assert batch_tile == batch or batch_tile % SUBLANE == 0, \
        "batch_tile must be a multiple of 8 (f32 sublane) unless it equals B"
    grid = (batch // batch_tile,)

    # Pad inputs once in the wrapper; padded columns are exact zeros.
    x_pad = jnp.pad(x, ((0, 0), (0, dp - input_dim))).astype(compute_dtype)
    eps_pad = jnp.pad(eps, ((0, 0), (0, lp - latent_dim))).astype(jnp.float32)

    # Full-array resident blocks for weights/biases; batch-tiled blocks otherwise.
    # TODO(synk): for large hidden_dim on v7x (64 MiB VMEM), single-buffer the
    # constant-index weight specs (pl.Buffered(1)) or K-tile the HxH layer.
    def full(arr):
        return pl.BlockSpec(arr.shape, lambda i: (0,) * arr.ndim)

    x_spec = pl.BlockSpec((batch_tile, dp), lambda i: (i, 0))
    eps_spec = pl.BlockSpec((batch_tile, lp), lambda i: (i, 0))
    out_spec = pl.BlockSpec((batch_tile, 3 * lp), lambda i: (i, 0))

    ordered_params = (
        kparams["w0"], kparams["b0"],
        kparams["w1"], kparams["b1"],
        kparams["w2"], kparams["b2"],
        kparams["w3"], kparams["b3"],
        kparams["wh"], kparams["bh"],
    )
    in_specs = [x_spec] + [full(p) for p in ordered_params] + [eps_spec]

    out_shape = jax.ShapeDtypeStruct((batch, 3 * lp), jnp.float32)

    flops = 2 * batch * (dp * 128 + 128 * hp + hp * hp + hp * 128 + 128 * 2 * lp)
    bytes_accessed = (
        x_pad.size * x_pad.dtype.itemsize
        + eps_pad.size * eps_pad.dtype.itemsize
        + sum(int(p.size) * p.dtype.itemsize for p in ordered_params)
        + batch * 3 * lp * 4
    )
    cost = pl.CostEstimate(flops=flops,
                           transcendentals=batch * lp,
                           bytes_accessed=bytes_accessed)

    out = pl.pallas_call(
        functools.partial(_vae_kernel, lp=lp),
        grid=grid,
        in_specs=in_specs,
        out_specs=out_spec,
        out_shape=out_shape,
        compiler_params=pltpu.CompilerParams(
            dimension_semantics=("parallel",),
            vmem_limit_bytes=32 * 1024 * 1024,
        ),
        cost_estimate=cost,
    )(x_pad, *ordered_params, eps_pad)

    z = out[:, 0 * lp:0 * lp + latent_dim]
    mu = out[:, 1 * lp:1 * lp + latent_dim]
    log_var = out[:, 2 * lp:2 * lp + latent_dim]
    return z, mu, log_var


def vae_forward_ref(x, params, eps, compute_dtype=jnp.bfloat16):
    """Pure-JAX reference applying the same bf16-operand / f32-accumulate scheme."""

    def dense(h, w, b):
        return jnp.dot(h.astype(compute_dtype), w.astype(compute_dtype),
                       preferred_element_type=jnp.float32) + b

    h = jnp.maximum(dense(x, params["w0"], params["b0"]), 0.0)
    h = jnp.maximum(dense(h, params["w1"], params["b1"]), 0.0)
    h = jnp.maximum(dense(h, params["w2"], params["b2"]), 0.0)
    h = jnp.maximum(dense(h, params["w3"], params["b3"]), 0.0)
    mu = dense(h, params["wmu"], params["bmu"])
    lv = dense(h, params["wlv"], params["blv"])
    z = eps * jnp.exp(0.5 * lv) + mu
    return z, mu, lv


if __name__ == "__main__":
    # Shapes consistent with VAE(input_dim, latent_dim, hidden_dim, hidden_num=4);
    # batch sized so the grid has 2 steps (pipelining / v7x megacore).
    B = 256
    input_dim = 32
    latent_dim = 8
    hidden_dim = 32

    root = jax.random.PRNGKey(0)
    k_params, k_x, k_eps = jax.random.split(root, 3)

    params = init_vae_params(k_params, input_dim, latent_dim, hidden_dim)
    x = jax.random.normal(k_x, (B, input_dim), jnp.float32)
    eps = jax.random.normal(k_eps, (B, latent_dim), jnp.float32)

    z, mu, log_var = vae_forward(x, params, eps)
    jax.block_until_ready((z, mu, log_var))

    # correctness check against a pure-JAX reference using the same bf16/f32 scheme
    z_r, mu_r, lv_r = vae_forward_ref(x, params, eps)
    assert jnp.allclose(mu, mu_r, atol=1e-3, rtol=1e-3)
    assert jnp.allclose(log_var, lv_r, atol=1e-3, rtol=1e-3)
    assert jnp.allclose(z, z_r, atol=1e-3, rtol=1e-3)

    print("KERNEL_OK")
</pallas_src>

<mosaic_0001>
module attributes {stable_mosaic.version = 11 : i64} {
  func.func @_vae_kernel(%arg0: i32, %arg1: memref<128x128xbf16, #tpu.memory_space<vmem>>, %arg2: memref<128x128xbf16, #tpu.memory_space<vmem>>, %arg3: memref<1x128xf32, #tpu.memory_space<vmem>>, %arg4: memref<128x128xbf16, #tpu.memory_space<vmem>>, %arg5: memref<1x128xf32, #tpu.memory_space<vmem>>, %arg6: memref<128x128xbf16, #tpu.memory_space<vmem>>, %arg7: memref<1x128xf32, #tpu.memory_space<vmem>>, %arg8: memref<128x128xbf16, #tpu.memory_space<vmem>>, %arg9: memref<1x128xf32, #tpu.memory_space<vmem>>, %arg10: memref<128x256xbf16, #tpu.memory_space<vmem>>, %arg11: memref<1x256xf32, #tpu.memory_space<vmem>>, %arg12: memref<128x128xf32, #tpu.memory_space<vmem>>, %arg13: memref<128x384xf32, #tpu.memory_space<vmem>>) attributes {dimension_semantics = [#tpu.dimension_semantics<parallel>], iteration_bounds = array<i64: 2>, scalar_prefetch = 0 : i64, scratch_operands = 0 : i64, tpu.core_type = #tpu.core_type<tc>, window_params = [{transform_indices = @transform_0, window_bounds = array<i64: 128, 128>}, {pipeline_mode = #tpu.pipeline_mode<synchronous>, transform_indices = @transform_1, window_bounds = array<i64: 128, 128>}, {pipeline_mode = #tpu.pipeline_mode<synchronous>, transform_indices = @transform_2, window_bounds = array<i64: 1, 128>}, {pipeline_mode = #tpu.pipeline_mode<synchronous>, transform_indices = @transform_3, window_bounds = array<i64: 128, 128>}, {pipeline_mode = #tpu.pipeline_mode<synchronous>, transform_indices = @transform_4, window_bounds = array<i64: 1, 128>}, {pipeline_mode = #tpu.pipeline_mode<synchronous>, transform_indices = @transform_5, window_bounds = array<i64: 128, 128>}, {pipeline_mode = #tpu.pipeline_mode<synchronous>, transform_indices = @transform_6, window_bounds = array<i64: 1, 128>}, {pipeline_mode = #tpu.pipeline_mode<synchronous>, transform_indices = @transform_7, window_bounds = array<i64: 128, 128>}, {pipeline_mode = #tpu.pipeline_mode<synchronous>, transform_indices = @transform_8, window_bounds = array<i64: 1, 128>}, {pipeline_mode = #tpu.pipeline_mode<synchronous>, transform_indices = @transform_9, window_bounds = array<i64: 128, 256>}, {pipeline_mode = #tpu.pipeline_mode<synchronous>, transform_indices = @transform_10, window_bounds = array<i64: 1, 256>}, {transform_indices = @transform_11, window_bounds = array<i64: 128, 128>}, {transform_indices = @transform_12, window_bounds = array<i64: 128, 384>}]} {
    %c0 = arith.constant 0 : index
    %c0_0 = arith.constant 0 : index
    %0 = vector.load %arg1[%c0, %c0_0] : memref<128x128xbf16, #tpu.memory_space<vmem>>, vector<128x128xbf16>
    %c0_1 = arith.constant 0 : index
    %c0_2 = arith.constant 0 : index
    %1 = vector.load %arg2[%c0_1, %c0_2] : memref<128x128xbf16, #tpu.memory_space<vmem>>, vector<128x128xbf16>
    %cst = arith.constant dense<0.000000e+00> : vector<128x128xf32>
    %2 = tpu.matmul %0, %1, %cst {dimension_numbers = #tpu.dot_dimension_numbers<[1], [0], [0], [1], [0, 0, 1, 1], [], []>} : vector<128x128xbf16>, vector<128x128xbf16>, vector<128x128xf32> -> vector<128x128xf32>
    %c0_3 = arith.constant 0 : index
    %c0_4 = arith.constant 0 : index
    %3 = vector.load %arg3[%c0_3, %c0_4] : memref<1x128xf32, #tpu.memory_space<vmem>>, vector<1x128xf32>
    %4 = vector.broadcast %3 : vector<1x128xf32> to vector<128x128xf32>
    %5 = arith.addf %2, %4 : vector<128x128xf32>
    %cst_5 = arith.constant 0.000000e+00 : f32
    %6 = vector.broadcast %cst_5 : f32 to vector<128x128xf32>
    %7 = arith.maximumf %5, %6 : vector<128x128xf32>
    %8 = arith.truncf %7 : vector<128x128xf32> to vector<128x128xbf16>
    %c0_6 = arith.constant 0 : index
    %c0_7 = arith.constant 0 : index
    %9 = vector.load %arg4[%c0_6, %c0_7] : memref<128x128xbf16, #tpu.memory_space<vmem>>, vector<128x128xbf16>
    %cst_8 = arith.constant dense<0.000000e+00> : vector<128x128xf32>
    %10 = tpu.matmul %8, %9, %cst_8 {dimension_numbers = #tpu.dot_dimension_numbers<[1], [0], [0], [1], [0, 0, 1, 1], [], []>} : vector<128x128xbf16>, vector<128x128xbf16>, vector<128x128xf32> -> vector<128x128xf32>
    %c0_9 = arith.constant 0 : index
    %c0_10 = arith.constant 0 : index
    %11 = vector.load %arg5[%c0_9, %c0_10] : memref<1x128xf32, #tpu.memory_space<vmem>>, vector<1x128xf32>
    %12 = vector.broadcast %11 : vector<1x128xf32> to vector<128x128xf32>
    %13 = arith.addf %10, %12 : vector<128x128xf32>
    %cst_11 = arith.constant 0.000000e+00 : f32
    %14 = vector.broadcast %cst_11 : f32 to vector<128x128xf32>
    %15 = arith.maximumf %13, %14 : vector<128x128xf32>
    %16 = arith.truncf %15 : vector<128x128xf32> to vector<128x128xbf16>
    %c0_12 = arith.constant 0 : index
    %c0_13 = arith.constant 0 : index
    %17 = vector.load %arg6[%c0_12, %c0_13] : memref<128x128xbf16, #tpu.memory_space<vmem>>, vector<128x128xbf16>
    %cst_14 = arith.constant dense<0.000000e+00> : vector<128x128xf32>
    %18 = tpu.matmul %16, %17, %cst_14 {dimension_numbers = #tpu.dot_dimension_numbers<[1], [0], [0], [1], [0, 0, 1, 1], [], []>} : vector<128x128xbf16>, vector<128x128xbf16>, vector<128x128xf32> -> vector<128x128xf32>
    %c0_15 = arith.constant 0 : index
    %c0_16 = arith.constant 0 : index
    %19 = vector.load %arg7[%c0_15, %c0_16] : memref<1x128xf32, #tpu.memory_space<vmem>>, vector<1x128xf32>
    %20 = vector.broadcast %19 : vector<1x128xf32> to vector<128x128xf32>
    %21 = arith.addf %18, %20 : vector<128x128xf32>
    %cst_17 = arith.constant 0.000000e+00 : f32
    %22 = vector.broadcast %cst_17 : f32 to vector<128x128xf32>
    %23 = arith.maximumf %21, %22 : vector<128x128xf32>
    %24 = arith.truncf %23 : vector<128x128xf32> to vector<128x128xbf16>
    %c0_18 = arith.constant 0 : index
    %c0_19 = arith.constant 0 : index
    %25 = vector.load %arg8[%c0_18, %c0_19] : memref<128x128xbf16, #tpu.memory_space<vmem>>, vector<128x128xbf16>
    %cst_20 = arith.constant dense<0.000000e+00> : vector<128x128xf32>
    %26 = tpu.matmul %24, %25, %cst_20 {dimension_numbers = #tpu.dot_dimension_numbers<[1], [0], [0], [1], [0, 0, 1, 1], [], []>} : vector<128x128xbf16>, vector<128x128xbf16>, vector<128x128xf32> -> vector<128x128xf32>
    %c0_21 = arith.constant 0 : index
    %c0_22 = arith.constant 0 : index
    %27 = vector.load %arg9[%c0_21, %c0_22] : memref<1x128xf32, #tpu.memory_space<vmem>>, vector<1x128xf32>
    %28 = vector.broadcast %27 : vector<1x128xf32> to vector<128x128xf32>
    %29 = arith.addf %26, %28 : vector<128x128xf32>
    %cst_23 = arith.constant 0.000000e+00 : f32
    %30 = vector.broadcast %cst_23 : f32 to vector<128x128xf32>
    %31 = arith.maximumf %29, %30 : vector<128x128xf32>
    %32 = arith.truncf %31 : vector<128x128xf32> to vector<128x128xbf16>
    %c0_24 = arith.constant 0 : index
    %c0_25 = arith.constant 0 : index
    %33 = vector.load %arg10[%c0_24, %c0_25] : memref<128x256xbf16, #tpu.memory_space<vmem>>, vector<128x256xbf16>
    %cst_26 = arith.constant dense<0.000000e+00> : vector<128x256xf32>
    %34 = tpu.matmul %32, %33, %cst_26 {dimension_numbers = #tpu.dot_dimension_numbers<[1], [0], [0], [1], [0, 0, 1, 1], [], []>} : vector<128x128xbf16>, vector<128x256xbf16>, vector<128x256xf32> -> vector<128x256xf32>
    %c0_27 = arith.constant 0 : index
    %c0_28 = arith.constant 0 : index
    %35 = vector.load %arg11[%c0_27, %c0_28] : memref<1x256xf32, #tpu.memory_space<vmem>>, vector<1x256xf32>
    %36 = vector.broadcast %35 : vector<1x256xf32> to vector<128x256xf32>
    %37 = arith.addf %34, %36 : vector<128x256xf32>
    %38 = vector.extract_strided_slice %37 {offsets = [0, 0], sizes = [128, 128], strides = [1, 1]} : vector<128x256xf32> to vector<128x128xf32>
    %39 = vector.extract_strided_slice %37 {offsets = [0, 128], sizes = [128, 128], strides = [1, 1]} : vector<128x256xf32> to vector<128x128xf32>
    %c0_29 = arith.constant 0 : index
    %c0_30 = arith.constant 0 : index
    %40 = vector.load %arg12[%c0_29, %c0_30] : memref<128x128xf32, #tpu.memory_space<vmem>>, vector<128x128xf32>
    %cst_31 = arith.constant 5.000000e-01 : f32
    %41 = vector.broadcast %cst_31 : f32 to vector<128x128xf32>
    %42 = arith.mulf %41, %39 : vector<128x128xf32>
    %43 = math.exp %42 : vector<128x128xf32>
    %44 = arith.mulf %40, %43 : vector<128x128xf32>
    %45 = arith.addf %44, %38 : vector<128x128xf32>
    %c0_32 = arith.constant 0 : index
    %c0_33 = arith.constant 0 : index
    %46 = vector.load %arg13[%c0_32, %c0_33] : memref<128x384xf32, #tpu.memory_space<vmem>>, vector<128x128xf32>
    tpu.vector_store %arg13[%c0_32, %c0_33], %45 {strides = array<i32>} : memref<128x384xf32, #tpu.memory_space<vmem>>, vector<128x128xf32>,
    %c0_34 = arith.constant 0 : index
    %c128 = arith.constant 128 : index
    %47 = vector.load %arg13[%c0_34, %c128] : memref<128x384xf32, #tpu.memory_space<vmem>>, vector<128x128xf32>
    tpu.vector_store %arg13[%c0_34, %c128], %38 {strides = array<i32>} : memref<128x384xf32, #tpu.memory_space<vmem>>, vector<128x128xf32>,
    %c0_35 = arith.constant 0 : index
    %c256 = arith.constant 256 : index
    %48 = vector.load %arg13[%c0_35, %c256] : memref<128x384xf32, #tpu.memory_space<vmem>>, vector<128x128xf32>
    tpu.vector_store %arg13[%c0_35, %c256], %39 {strides = array<i32>} : memref<128x384xf32, #tpu.memory_space<vmem>>, vector<128x128xf32>,
    return
  }
  func.func @transform_0(%arg0: i32) -> (i32, i32) {
    %c0_i32 = arith.constant 0 : i32
    %c0_i32_0 = arith.constant 0 : i32
    return %arg0, %c0_i32 : i32, i32
  }
  func.func @transform_1(%arg0: i32) -> (i32, i32) {
    %c0_i32 = arith.constant 0 : i32
    %c0_i32_0 = arith.constant 0 : i32
    %c0_i32_1 = arith.constant 0 : i32
    return %c0_i32, %c0_i32_0 : i32, i32
  }
  func.func @transform_2(%arg0: i32) -> (i32, i32) {
    %c0_i32 = arith.constant 0 : i32
    %c0_i32_0 = arith.constant 0 : i32
    %c0_i32_1 = arith.constant 0 : i32
    return %c0_i32, %c0_i32_0 : i32, i32
  }
  func.func @transform_3(%arg0: i32) -> (i32, i32) {
    %c0_i32 = arith.constant 0 : i32
    %c0_i32_0 = arith.constant 0 : i32
    %c0_i32_1 = arith.constant 0 : i32
    return %c0_i32, %c0_i32_0 : i32, i32
  }
  func.func @transform_4(%arg0: i32) -> (i32, i32) {
    %c0_i32 = arith.constant 0 : i32
    %c0_i32_0 = arith.constant 0 : i32
    %c0_i32_1 = arith.constant 0 : i32
    return %c0_i32, %c0_i32_0 : i32, i32
  }
  func.func @transform_5(%arg0: i32) -> (i32, i32) {
    %c0_i32 = arith.constant 0 : i32
    %c0_i32_0 = arith.constant 0 : i32
    %c0_i32_1 = arith.constant 0 : i32
    return %c0_i32, %c0_i32_0 : i32, i32
  }
  func.func @transform_6(%arg0: i32) -> (i32, i32) {
    %c0_i32 = arith.constant 0 : i32
    %c0_i32_0 = arith.constant 0 : i32
    %c0_i32_1 = arith.constant 0 : i32
    return %c0_i32, %c0_i32_0 : i32, i32
  }
  func.func @transform_7(%arg0: i32) -> (i32, i32) {
    %c0_i32 = arith.constant 0 : i32
    %c0_i32_0 = arith.constant 0 : i32
    %c0_i32_1 = arith.constant 0 : i32
    return %c0_i32, %c0_i32_0 : i32, i32
  }
  func.func @transform_8(%arg0: i32) -> (i32, i32) {
    %c0_i32 = arith.constant 0 : i32
    %c0_i32_0 = arith.constant 0 : i32
    %c0_i32_1 = arith.constant 0 : i32
    return %c0_i32, %c0_i32_0 : i32, i32
  }
  func.func @transform_9(%arg0: i32) -> (i32, i32) {
    %c0_i32 = arith.constant 0 : i32
    %c0_i32_0 = arith.constant 0 : i32
    %c0_i32_1 = arith.constant 0 : i32
    return %c0_i32, %c0_i32_0 : i32, i32
  }
  func.func @transform_10(%arg0: i32) -> (i32, i32) {
    %c0_i32 = arith.constant 0 : i32
    %c0_i32_0 = arith.constant 0 : i32
    %c0_i32_1 = arith.constant 0 : i32
    return %c0_i32, %c0_i32_0 : i32, i32
  }
  func.func @transform_11(%arg0: i32) -> (i32, i32) {
    %c0_i32 = arith.constant 0 : i32
    %c0_i32_0 = arith.constant 0 : i32
    return %arg0, %c0_i32 : i32, i32
  }
  func.func @transform_12(%arg0: i32) -> (i32, i32) {
    %c0_i32 = arith.constant 0 : i32
    %c0_i32_0 = arith.constant 0 : i32
    return %arg0, %c0_i32 : i32, i32
  }
}

</mosaic_0001>

<bundles_post_ra>
// kernel: tpu_custom_call.1
= control target key start
LH: loop header
LB: loop body
LE: loop exit
PB: predicated region body
PF: predicated region fallthrough
CT: control target
= control target key end

     0   :  { %s3034_s0 = inlined_call_operand.hbm [shape: bf16[256,128], index: 0, kind: input, shape index: {}]   ;;  %s3035_s1 = inlined_call_operand.hbm [shape: bf16[128,128], index: 1, kind: input, shape index: {}]   ;;  %s3036_s2 = inlined_call_operand.vmem [shape: f32[1,128], index: 2, kind: input, shape index: {}]   ;;  %s3037_s3 = inlined_call_operand.hbm [shape: bf16[128,128], index: 3, kind: input, shape index: {}]   ;;  %s3038_s4 = inlined_call_operand.hbm [shape: f32[1,128], index: 4, kind: input, shape index: {}]   ;;  %s3039_s5 = inlined_call_operand.hbm [shape: bf16[128,128], index: 5, kind: input, shape index: {}]   ;;  %s3040_s6 = inlined_call_operand.vmem [shape: f32[1,128], index: 6, kind: input, shape index: {}]   ;;  %s3041_s7 = inlined_call_operand.hbm [shape: bf16[128,128], index: 7, kind: input, shape index: {}]   ;;  %s3042_s8 = inlined_call_operand.vmem [shape: f32[1,128], index: 8, kind: input, shape index: {}]   ;;  %s3043_s9 = inlined_call_operand.hbm [shape: bf16[128,256], index: 9, kind: input, shape index: {}]   ;;  %s3044_s10 = inlined_call_operand.vmem [shape: f32[1,256], index: 10, kind: input, shape index: {}]   ;;  %s3045_s11 = inlined_call_operand.hbm [shape: f32[256,128], index: 11, kind: input, shape index: {}]   ;;  %s3046_s12 = inlined_call_operand.hbm [shape: f32[256,384], index: 12, kind: output, shape index: {}]  }
   0x1   :  { %3056 = sst [smem:[#allocation28_spill]] %s3035_s1 }
   0x2   :  { %3057 = sst [smem:[#allocation29_spill]] %s3037_s3 }
   0x3   :  { %3058 = sst [smem:[#allocation30_spill]] %s3038_s4 }
   0x4   :  { %3059 = sst [smem:[#allocation31_spill]] %s3039_s5 }
   0x5   :  { %3060 = sst [smem:[#allocation32_spill]] %s3041_s7 }
   0x6   :  { %3061 = sst [smem:[#allocation33_spill]] %s3043_s9 }
   0x7   :  { %17 = vsyncpa [#allocation3], 0 }
   0x8   :  { %19 = vsyncpa [#allocation3 + $0x1], 0 }
   0x9   :  { %20 = vsyncpa [#allocation6], 0 }
   0xa   :  { %21 = vsyncpa [#allocation9], 0 }
   0xb   :  { %22 = vsyncpa [#allocation12], 0 }
   0xc   :  { %23 = vsyncpa [#allocation15], 0 }
   0xd   :  { %25 = vsyncpa [#allocation15 + $0x1], 0 }
   0xe   :  { %26 = vsyncpa [#allocation4], 0 }
   0xf   :  { %28 = vsyncpa [#allocation4 + $0x1], 0  ;;  %s2602_s21 = smov 0   ;;  %s2604_s22 = smov 0  }
  0x10   :  { %s2606_s23 = smov 0   ;;  %s2608_s24 = smov 0  }
  0x11 LB: > { %3062 = sst [smem:[#allocation23_spill]] %s2511_s21  ;;  %s2626_s28 = sadd.s32 4294967295, %s2523_s24   ;;  %s2523_s24 = sphi %s2608_s24, %s3087_s24   ;;  %s2519_s23 = sphi %s2606_s23, %s3089_s23   ;;  %s2515_s22 = sphi %s2604_s22, %s3091_s22   ;;  %s2511_s21 = sphi %s2602_s21, %s3090_s21  }
  0x12   : > { %3063 = sst [smem:[#allocation24_spill]] %s2519_s23  ;;  %p1719_p0 = scmp.ge.s32.totalorder %s2523_s24, 1 }
  0x13   : > { %s3064_s1 = sld [smem:[#allocation28_spill]]  ;;  %p55_p1 = scmp.eq.s32.totalorder %s2626_s28, 0 }
  0x14   : > { %p327_p2 = scmp.lt.s32.totalorder %s2523_s24, 3  ;;  %s2525_s30 = smov [#allocation5]  }
  0x15   : > { %s340_s13 = sshll.u32 %s2525_s30, 4  ;;  %s3066_s4 = sld [smem:[#allocation30_spill]]  ;;  %s341_s13 = int_to_ptr.vmem [resolvable:$true] %s340_s13 }
  0x16   : > { %p2631_p3 = pnand %p1719_p0, %p327_p2  ;;  %s3068_s7 = sld [smem:[#allocation32_spill]] }
  0x17   : > { %s2526_s25 = smov [#allocation8]   ;;  %s3049_s30 = smov 64  }
  0x18   : > { %p2077_p4 = pneg %p2631_p3  ;;  %s372_s26 = sshll.u32 %s2526_s25, 4  ;;  %s373_s26 = int_to_ptr.vmem [resolvable:$true] %s372_s26 }
  0x19   : > { %s338_s27 = sshll.u32 %s3064_s1, 4  ;;  %s3050_s1 = smov 4   ;;  %s339_s27 = int_to_ptr.hbm [resolvable:$true] %s338_s27 }
  0x1a   : > { %p2643_p6 = pnand %p2077_p4, %p55_p1  ;;  %s3069_s3 = sld [smem:[#allocation29_spill]] }
  0x1b   : > { %s370_s16 = sshll.u32 %s3066_s4, 4  ;;  %s2529_s18 = smov [#allocation11]   ;;  %s371_s16 = int_to_ptr.hbm [resolvable:$true] %s370_s16 }
  0x1c   : > { %s398_s20 = sshll.u32 %s3068_s7, 4  ;;  %s400_s19 = sshll.u32 %s2529_s18, 4  ;;  %s399_s20 = int_to_ptr.hbm [resolvable:$true] %s398_s20  ;;  %s401_s19 = int_to_ptr.vmem [resolvable:$true] %s400_s19 }
  0x1d   : > { %2080 = dma.hbm_to_vmem [thread:$0]  (!%p2643_p6), %s339_s27, 1024, %s341_s13, [#allocation6], %s3049_s30, %s3049_s30, %s3050_s1  }
  0x1e   : > { %2086 = dma.hbm_to_vmem [thread:$0]  (!%p2643_p6), %s371_s16, 16, %s373_s26, [#allocation9]  }
  0x1f   : > { %2092 = dma.hbm_to_vmem [thread:$0]  (!%p2643_p6), %s399_s20, 1024, %s401_s19, [#allocation12], %s3049_s30, %s3049_s30, %s3050_s1  }
  0x20   : > { %s355_s4 = sshll.u32 %s3069_s3, 4  ;;  %s2530_s25 = smov [#allocation7]   ;;  %s356_s4 = int_to_ptr.hbm [resolvable:$true] %s355_s4 }
  0x21   : > { %s357_s27 = sshll.u32 %s2530_s25, 4  ;;  %s3070_s5 = sld [smem:[#allocation31_spill]]  ;;  %s358_s27 = int_to_ptr.vmem [resolvable:$true] %s357_s27 }
  0x22   : > { %2083 = dma.hbm_to_vmem [thread:$0]  (!%p2643_p6), %s356_s4, 1024, %s358_s27, [#allocation6], %s3049_s30, %s3049_s30, %s3050_s1  }
  0x23   : > { %s3071_s9 = sld [smem:[#allocation33_spill]]  ;;  %s2531_s15 = smov [#allocation10]  }
  0x24   : > { %s383_s7 = sshll.u32 %s2531_s15, 4  ;;  %s2532_s4 = smov [#allocation13]   ;;  %s384_s7 = int_to_ptr.vmem [resolvable:$true] %s383_s7 }
  0x25   : > { %s417_s18 = sshll.u32 %s2532_s4, 4  ;;  %s3047_s19 = smov 128   ;;  %s418_s18 = int_to_ptr.vmem [resolvable:$true] %s417_s18 }
  0x26   : > { %s3048_s25 = smov 8   ;;  %s1718_s27 = sadd.s32 4294967294, %s2523_s24  }
  0x27   : > { %s381_s16 = sshll.u32 %s3070_s5, 4  ;;  %s2688_s13 = sadd.s32 1, %s2523_s24   ;;  %s382_s16 = int_to_ptr.hbm [resolvable:$true] %s381_s16 }
  0x28   : > { %2089 = dma.hbm_to_vmem [thread:$0]  (!%p2643_p6), %s382_s16, 1024, %s384_s7, [#allocation9], %s3049_s30, %s3049_s30, %s3050_s1  }
  0x29   : > { %s415_s20 = sshll.u32 %s3071_s9, 4  ;;  %3072 = sst [smem:[#allocation25_spill]] %s2688_s13  ;;  %s416_s20 = int_to_ptr.hbm [resolvable:$true] %s415_s20 }
  0x2a   : > { %2095 = dma.hbm_to_vmem [thread:$0]  (!%p2643_p6), %s416_s20, 2048, %s418_s18, [#allocation12], %s3047_s19, %s3047_s19, %s3048_s25  }
  0x2b   : > { %s38_s26 = ssub.s32 %s2523_s24, %s2688_s13  ;;  %s41_s16 = sadd.s32 1, %s2519_s23 }
  0x2c   : > { %p39_p7 = scmp.eq.s32.totalorder %s38_s26, 0  ;;  %p48_p8 = scmp.ne.s32.totalorder %s2519_s23, %s2515_s22 }
  0x2d   : > { %p49_p9 = scmp.eq.s32.totalorder %s2523_s24, 0  ;;  %p54_p10 = scmp.ne.s32.totalorder %s2515_s22, %s2511_s21 }
  0x2e   : > { %s2699_s14 = scalar_select %p39_p7, %s2519_s23, %s41_s16  }
  0x2f   : > { %p2701_p11 = por %p49_p9, %p48_p8  ;;  %p2707_p12 = por %p55_p1, %p54_p10 }
  0x30   : > { %3073 = sst [smem:[#allocation26_spill]] %s2699_s14  ;;  %p314_p13 = scmp.eq.s32.totalorder %s2626_s28, 1 }
  0x31   : > { %p320_p0 = scmp.eq.s32.totalorder %s1718_s27, 1  ;;  %p2113_p2 = scmp.lt.s32.totalorder %s2523_s24, 2 }
  0x32   : > { %s2714_s15 = sand.u32 1, %s2519_s23   ;;  %p2716_p4 = por %p314_p13, %p48_p8 }
  0x33   : > { %p2720_p6 = por %p320_p0, %p54_p10  ;;  %s1727_s18 = sshll.u32 %s2714_s15, 6 }
  0x34   : > { %s1971_s26 = sshll.u32 %s2523_s24, 6  ;;  %s438_s25 = scalar_lea.vmem [#allocation2], %s1727_s18 }
  0x35   : > { %s3077_s4 = scalar_select %p2720_p6, 1, 0 }
  0x36   : > { %s443_s27 = scalar_lea.hbm %s3034_s0, %s1971_s26  ;;  %s446_s30 = sshll.u32 %s438_s25, 4  ;;  %s447_s30 = int_to_ptr.vmem [resolvable:$true] %s446_s30 }
  0x37   : > { %3078 = sst [smem:[#allocation27_spill]] %s3077_s4  ;;  %s444_s1 = sshll.u32 %s443_s27, 4  ;;  %s445_s1 = int_to_ptr.hbm [resolvable:$true] %s444_s1 }
  0x38   : > { %p2731_p7 = pnand %p2113_p2, %p2701_p11  ;;  %s1730_s5 = sshll.u32 %s2714_s15, 7 }
  0x39   : > { %s435_s9 = scalar_lea.sflag [#allocation3], %s2714_s15  ;;  %s2381_s14 = sshra.s32 %s445_s1, 4  ;;  %s2382_s14 = int_to_ptr.hbm [resolvable:$true] %s2381_s14 }
  0x3a   : > { %s2383_s23 = scalar_lea.hbm %s2382_s14, 64  ;;  %p2385_p9 = pneg %p2731_p7 }
  0x3b   : > { %p2384_p8 = scmp.ne.s32.totalorder %s2382_s14, %s2383_s23  ;;  %s2388_s17 = scalar_lea.hbm %s3034_s0, 128 }
  0x3c   : > { %p2389_p11 = scmp.lt.s32.totalorder %s2382_s14, %s3034_s0  ;;  %p2390_p0 = scmp.lt.s32.totalorder %s2388_s17, %s2383_s23 }
  0x3d   : > { %p2386_p10 = pnand %p2385_p9, %p2384_p8 }
  0x3e   : > { %p2391_p2 = por %p2390_p0, %p2389_p11 }
  0x3f   : > { %p2387_p13 = pneg %p2386_p10 }
  0x41   : > { %p2392_p5 = pnand %p2391_p2, %p2387_p13 }
  0x43   : > { %2395 = shalt.err (!%p2392_p5)
}
  0x44   : > { %s3080_s16 = smov 4   ;;  %s3081_s27 = smov 64  }
  0x45   : > { %2099 = dma.hbm_to_vmem [thread:$0]  (!%p2731_p7), %s445_s1, 1024, %s447_s30, %s435_s9, %s3081_s27, %s3081_s27, %s3080_s16  }
  0x46   : > { %s1972_s13 = sshll.u32 %s2523_s24, 7  ;;  %s460_s19 = scalar_lea.vmem [#allocation14], %s1730_s5 }
  0x47   : > { %s468_s25 = sshll.u32 %s460_s19, 4  ;;  %s465_s14 = scalar_lea.hbm %s3045_s11, %s1972_s13  ;;  %s469_s25 = int_to_ptr.vmem [resolvable:$true] %s468_s25 }
  0x48   : > { %s466_s23 = sshll.u32 %s465_s14, 4  ;;  %s457_s17 = scalar_lea.sflag [#allocation15], %s2714_s15  ;;  %s467_s23 = int_to_ptr.hbm [resolvable:$true] %s466_s23 }
  0x49   : > { %s2411_s18 = sshra.s32 %s467_s23, 4  ;;  %s2418_s5 = scalar_lea.hbm %s3045_s11, 256  ;;  %s2412_s18 = int_to_ptr.hbm [resolvable:$true] %s2411_s18 }
  0x4a   : > { %s2413_s26 = scalar_lea.hbm %s2412_s18, 128  ;;  %p2419_p13 = scmp.lt.s32.totalorder %s2412_s18, %s3045_s11 }
  0x4b   : > { %p2414_p5 = scmp.ne.s32.totalorder %s2412_s18, %s2413_s26  ;;  %p2420_p11 = scmp.lt.s32.totalorder %s2418_s5, %s2413_s26 }
  0x4d   : > { %p2416_p8 = pnand %p2414_p5, %p2385_p9  ;;  %p2421_p0 = por %p2420_p11, %p2419_p13 }
  0x4f   : > { %p2417_p10 = pneg %p2416_p8 }
  0x51   : > { %p2422_p2 = pnand %p2421_p0, %p2417_p10 }
  0x53   : > { %2425 = shalt.err (!%p2422_p2)
}
  0x54   : > { %s3082_s21 = smov 8   ;;  %s3083_s13 = smov 128  }
  0x55   : > { %2102 = dma.hbm_to_vmem [thread:$0]  (!%p2731_p7), %s467_s23, 2048, %s469_s25, %s457_s17, %s3083_s13, %s3083_s13, %s3082_s21  }
  0x56   : > { %480 = sbr.rel (%p2631_p3) target bundleno = 972 (0x3cc), region = 68  ;;  %s2775_s15 = sand.u32 (!%p2631_p3), 1, %s2515_s22  }
  0x57   : > { %s1734_s4 = sshll.u32 (!%p2631_p3), %s2775_s15, 6  ;;  %s483_s27 = scalar_lea.sflag (!%p2631_p3), [#allocation3], %s2775_s15 }
  0x58   : > { %s2779_s19 = scalar_lea.vmem (!%p2631_p3), [#allocation2], %s1734_s4 }
  0x5b   : > { %2486 = dma.done.wait (%p2707_p12), %s483_s27, 1024  }
  0x5c   : > { %2488 = vsyncadd (%p2707_p12), %s483_s27, 4294966272 }
  0x5d   : > { %2490 = dma.done.wait (%p55_p1), [#allocation6], 2048  }
  0x5e   : > { %2492 = vsyncadd (%p55_p1), [#allocation6], 4294965248 }
  0x5f   : > { %2494 = dma.done.wait (%p55_p1), [#allocation9], 1040  }
  0x60   : > { %2496 = vsyncadd (%p55_p1), [#allocation9], 4294966256 }
  0x61   : > { %2498 = dma.done.wait (%p55_p1), [#allocation12], 3072  }
  0x62   : > { %2500 = vsyncadd (%p55_p1), [#allocation12], 4294964224  ;;  %s1741_s3 = sshll.u32 %s2775_s15, 7  ;;  %s523_s29 = scalar_lea.sflag [#allocation15], %s2775_s15 }
  0x63   : > { %s2799_s25 = scalar_lea.vmem [#allocation14], %s1741_s3 }
  0x64   : > { %2502 = dma.done.wait (%p2707_p12), %s523_s29, 2048  }
  0x65   : > { %2504 = vsyncadd (%p2707_p12), %s523_s29, 4294965248  ;;  %v1988_v0 = vld [vmem:[#allocation5 + $0x38] sm:$0xff]  ;;  %v1987_v1 = vld [vmem:[#allocation5 + $0x30] sm:$0xff]  ;;  %s2045_s5 = smul.u32 384, %s2775_s15  ;;  %s1549_s3 = scalar_lea.sflag [#allocation4], %s2775_s15 }
  0x66   : > { %708 = vmatpush.bf16.msra.mxu0 %v1988_v0  ;;  %2029 = vmatpush.bf16.msra.mxu2 %v1988_v0  ;;  %v1986_v2 = vld [vmem:[#allocation5 + $0x28] sm:$0xff]  ;;  %v1985_v3 = vld [vmem:[#allocation5 + $0x20] sm:$0xff]  ;;  %v1984_v4 = vld [vmem:[#allocation5 + $0x18] sm:$0xff]  ;;  %s2046_s16 = smul.u32 384, %s2626_s28 }
  0x67   : > { %v1983_v5 = vld [vmem:[#allocation5 + $0x10] sm:$0xff]  ;;  %v1982_v6 = vld [vmem:[#allocation5 + $0x8] sm:$0xff]  ;;  %v1981_v7 = vld [vmem:[#allocation5] sm:$0xff]  ;;  %s2904_s30 = scalar_lea.vmem [#allocation16], %s2045_s5 }
  0x68   : > { %v1973_v8 = vld [vmem:[%s2779_s19] sm:$0xff]  ;;  %v1974_v10 = vld [vmem:[%s2779_s19 + $0x8] sm:$0xff]  ;;  %v1996_v12 = vld [vmem:[#allocation7 + $0x38] sm:$0xff]  ;;  %s1561_s4 = scalar_lea.hbm %s3046_s12, %s2046_s16  ;;  %s1562_s27 = sshll.u32 %s2904_s30, 4  ;;  %s1563_s27 = int_to_ptr.vmem [resolvable:$true] %s1562_s27 }
  0x69   : > { %v1977_v9 = vld [vmem:[%s2779_s19 + $0x20] sm:$0xff]  ;;  %v1978_v11 = vld [vmem:[%s2779_s19 + $0x28] sm:$0xff]  ;;  %849 = vmatpush.bf16.msra.mxu1 %v1996_v12  ;;  %v1995_v13 = vld [vmem:[#allocation7 + $0x30] sm:$0xff]  ;;  %2037 = vmatpush.bf16.msra.mxu3 %v1996_v12 }
  0x6a   : > { %709 = vmatpush.bf16.msra.mxu0 %v1987_v1  ;;  %2030 = vmatpush.bf16.msra.mxu2 %v1987_v1  ;;  %v1994_v14 = vld [vmem:[#allocation7 + $0x28] sm:$0xff]  ;;  %v1975_v15 = vld [vmem:[%s2779_s19 + $0x10] sm:$0xff]  ;;  %v1993_v16 = vld [vmem:[#allocation7 + $0x20] sm:$0xff] }
  0x6b   : > { %v1979_v17 = vld [vmem:[%s2779_s19 + $0x30] sm:$0xff]  ;;  %v1976_v18 = vld [vmem:[%s2779_s19 + $0x18] sm:$0xff]  ;;  %v1990_v22 = vld [vmem:[#allocation7 + $0x8] sm:$0xff] }
  0x6c   : > { %v1980_v19 = vld [vmem:[%s2779_s19 + $0x38] sm:$0xff]  ;;  %v1991_v21 = vld [vmem:[#allocation7 + $0x10] sm:$0xff]  ;;  %v1989_v23 = vld [vmem:[#allocation7] sm:$0xff]  ;;  %s1564_s19 = sshll.u32 %s1561_s4, 4  ;;  %s1565_s19 = int_to_ptr.hbm [resolvable:$true] %s1564_s19 }
  0x6d   : > { %850 = vmatpush.bf16.msra.mxu1 %v1995_v13  ;;  %2038 = vmatpush.bf16.msra.mxu3 %v1995_v13  ;;  %v1992_v20 = vld [vmem:[#allocation7 + $0x18] sm:$0xff]  ;;  %v2816_v25 = vld [vmem:[%s3036_s2] ss:$0 sm:$0xff]  ;;  %v2002_v59 = vld [vmem:[#allocation10 + $0x28] sm:$0xff]  ;;  %s2455_s28 = sshra.s32 %s1565_s19, 4  ;;  %s2456_s28 = int_to_ptr.hbm [resolvable:$true] %s2455_s28 }
  0x6e   : > { %710 = vmatpush.bf16.msra.mxu0 %v1986_v2  ;;  %2031 = vmatpush.bf16.msra.mxu2 %v1986_v2  ;;  %v2004_v48 = vld [vmem:[#allocation10 + $0x38] sm:$0xff]  ;;  %v2003_v54 = vld [vmem:[#allocation10 + $0x30] sm:$0xff]  ;;  %v2001_v63 = vld [vmem:[#allocation10 + $0x20] sm:$0xff]  ;;  %s2457_s29 = scalar_lea.hbm %s2456_s28, 384  ;;  %p2462_p7 = scmp.lt.s32.totalorder %s2456_s28, %s3046_s12 }
  0x6f   : > { %v2000_v2 = vld [vmem:[#allocation10 + $0x18] sm:$0xff]  ;;  %p2458_p1 = scmp.ne.s32.totalorder %s2456_s28, %s2457_s29 }
  0x71   : > { %851 = vmatpush.bf16.msra.mxu1 %v1994_v14  ;;  %2039 = vmatpush.bf16.msra.mxu3 %v1994_v14  ;;  %p2459_p3 = pnand %p2458_p1, %p2716_p4 }
  0x72   : > { %711 = vmatpush.bf16.msra.mxu0 %v1985_v3  ;;  %2032 = vmatpush.bf16.msra.mxu2 %v1985_v3 }
  0x73   : > { %p2460_p12 = pneg %p2459_p3 }
  0x75   : > { %852 = vmatpush.bf16.msra.mxu1 %v1993_v16  ;;  %2040 = vmatpush.bf16.msra.mxu3 %v1993_v16 }
  0x76   : > { %712 = vmatpush.bf16.msra.mxu0 %v1984_v4  ;;  %2033 = vmatpush.bf16.msra.mxu2 %v1984_v4 }
  0x79   : > { %853 = vmatpush.bf16.msra.mxu1 %v1992_v20  ;;  %2041 = vmatpush.bf16.msra.mxu3 %v1992_v20 }
  0x7a   : > { %713 = vmatpush.bf16.msra.mxu0 %v1983_v5  ;;  %2034 = vmatpush.bf16.msra.mxu2 %v1983_v5 }
  0x7d   : > { %854 = vmatpush.bf16.msra.mxu1 %v1991_v21  ;;  %2042 = vmatpush.bf16.msra.mxu3 %v1991_v21 }
  0x7e   : > { %714 = vmatpush.bf16.msra.mxu0 %v1982_v6  ;;  %2035 = vmatpush.bf16.msra.mxu2 %v1982_v6 }
  0x81   : > { %855 = vmatpush.bf16.msra.mxu1 %v1990_v22  ;;  %2043 = vmatpush.bf16.msra.mxu3 %v1990_v22 }
  0x82   : > { %715 = vmatpush.bf16.msra.mxu0 %v1981_v7  ;;  %2036 = vmatpush.bf16.msra.mxu2 %v1981_v7  ;;  %v1999_v7 = vld [vmem:[#allocation10 + $0x10] sm:$0xff] }
  0x85   : > { %716 = vmatmul.bf16.vlgmr.msra.gmra.mxu0 %v1973_v8  ;;  %736 = vmatmul.bf16.vlgmr.msra.gmra.mxu2 %v1977_v9 }
  0x86   : > { %856 = vmatpush.bf16.msra.mxu1 %v1989_v23  ;;  %2044 = vmatpush.bf16.msra.mxu3 %v1989_v23 }
  0x87   : > { %990 = vmatpush.bf16.msrb.mxu2 %v2004_v48 }
  0x8b   : > { %991 = vmatpush.bf16.msrb.mxu2 %v2003_v54 }
  0x8f   : > { %992 = vmatpush.bf16.msrb.mxu2 %v2002_v59 }
  0x93   : > { %993 = vmatpush.bf16.msrb.mxu2 %v2001_v63 }
  0x95   : > { %721 = vmatmul.bf16.gmra.mxu0 %v1974_v10  ;;  %741 = vmatmul.bf16.gmra.mxu2 %v1978_v11  ;;  %v1998_v11 = vld [vmem:[#allocation10 + $0x8] sm:$0xff] }
  0x97   : > { %994 = vmatpush.bf16.msrb.mxu2 %v2000_v2  ;;  %v2009_v2 = vld [vmem:[#allocation11 + $0x20] sm:$0xff] }
  0x9b   : > { %995 = vmatpush.bf16.msrb.mxu2 %v1999_v7 }
  0x9f   : > { %996 = vmatpush.bf16.msrb.mxu2 %v1998_v11  ;;  %v2007_v11 = vld [vmem:[#allocation11 + $0x10] sm:$0xff] }
  0xa5   : > { %726 = vmatmul.bf16.gmra.mxu0 %v1975_v15  ;;  %746 = vmatmul.bf16.gmra.mxu2 %v1979_v17 }
  0xb5   : > { %731 = vmatmul.bf16.gmra.mxu0 %v1976_v18  ;;  %751 = vmatmul.bf16.gmra.mxu2 %v1980_v19 }
 0x102   : > { %v717_v24 = vpop.f32.mrf.mxu0 }
 0x103   : > { %v718_v26 = vadd.f32 %v2816_v25, %v717_v24  ;;  %v1997_v24 = vld [vmem:[#allocation10] sm:$0xff] }
 0x104   : > { %997 = vmatpush.bf16.msrb.mxu2 %v1997_v24 }
 0x105   : > { %v757_v30 = vmax.f32 %v718_v26, 0.0 }
 0x108   : > { %v737_v29 = vpop.f32.mrf.mxu2 }
 0x109   : > { %v738_v33 = vadd.f32 %v2816_v25, %v737_v29 }
 0x10a   : > { %v719_v27 = vpop.f32.mrf.mxu0 }
 0x10b   : > { %v720_v28 = vadd.f32 %v2816_v25, %v719_v27  ;;  %v765_v36 = vmax.f32 %v738_v33, 0.0  ;;  %v2834_v27 = vld [vmem:[#allocation8] ss:$0 sm:$0xff] }
 0x10d   : > { %v758_v31 = vmax.f32 %v720_v28, 0.0 }
 0x10f   : > { %v773_v32 = vpack.c.bf16 %v758_v31, %v757_v30 }
 0x110   : > { %v739_v35 = vpop.f32.mrf.mxu2 }
 0x111   : > { %857 = vmatmul.bf16.vlgmr.msra.gmra.mxu1 %v773_v32  ;;  %v740_v37 = vadd.f32 %v2816_v25, %v739_v35 }
 0x112   : > { %v722_v34 = vpop.f32.mrf.mxu0 }
 0x113   : > { %v766_v38 = vmax.f32 %v740_v37, 0.0  ;;  %v723_v39 = vadd.f32 %v2816_v25, %v722_v34 }
 0x115   : > { %v777_v40 = vpack.c.bf16 %v766_v38, %v765_v36  ;;  %v759_v44 = vmax.f32 %v723_v39, 0.0 }
 0x117   : > { %877 = vmatmul.bf16.vlgmr.msra.gmra.mxu3 %v777_v40 }
 0x118   : > { %v742_v43 = vpop.f32.mrf.mxu2 }
 0x119   : > { %v743_v47 = vadd.f32 %v2816_v25, %v742_v43 }
 0x11a   : > { %v724_v41 = vpop.f32.mrf.mxu0 }
 0x11b   : > { %v725_v42 = vadd.f32 %v2816_v25, %v724_v41  ;;  %v767_v51 = vmax.f32 %v743_v47, 0.0 }
 0x11d   : > { %v760_v45 = vmax.f32 %v725_v42, 0.0 }
 0x11f   : > { %v774_v46 = vpack.c.bf16 %v760_v45, %v759_v44 }
 0x120   : > { %v744_v50 = vpop.f32.mrf.mxu2 }
 0x121   : > { %862 = vmatmul.bf16.gmra.mxu1 %v774_v46  ;;  %v745_v52 = vadd.f32 %v2816_v25, %v744_v50 }
 0x122   : > { %v727_v49 = vpop.f32.mrf.mxu0 }
 0x123   : > { %v768_v53 = vmax.f32 %v745_v52, 0.0  ;;  %v728_v55 = vadd.f32 %v2816_v25, %v727_v49 }
 0x125   : > { %v778_v56 = vpack.c.bf16 %v768_v53, %v767_v51  ;;  %v761_v61 = vmax.f32 %v728_v55, 0.0 }
 0x127   : > { %882 = vmatmul.bf16.gmra.mxu3 %v778_v56  ;;  %v2012_v56 = vld [vmem:[#allocation11 + $0x38] sm:$0xff] }
 0x128   : > { %v747_v60 = vpop.f32.mrf.mxu2  ;;  %1131 = vmatpush.bf16.msrb.mxu3 %v2012_v56  ;;  %v2027_v56 = vld [vmem:[#allocation13 + $0x74] sm:$0xf] }
 0x129   : > { %v748_v1 = vadd.f32 %v2816_v25, %v747_v60 }
 0x12a   : > { %v729_v57 = vpop.f32.mrf.mxu0 }
 0x12b   : > { %v730_v58 = vadd.f32 %v2816_v25, %v729_v57  ;;  %v769_v5 = vmax.f32 %v748_v1, 0.0  ;;  %v2010_v1 = vld [vmem:[#allocation11 + $0x28] sm:$0xff] }
 0x12d   : > { %v762_v62 = vmax.f32 %v730_v58, 0.0  ;;  %v2011_v58 = vld [vmem:[#allocation11 + $0x30] sm:$0xff] }
 0x12e   : > { %1132 = vmatpush.bf16.msrb.mxu3 %v2011_v58 }
 0x12f   : > { %v775_v0 = vpack.c.bf16 %v762_v62, %v761_v61 }
 0x130   : > { %v749_v4 = vpop.f32.mrf.mxu2 }
 0x131   : > { %867 = vmatmul.bf16.gmra.mxu1 %v775_v0  ;;  %v750_v6 = vadd.f32 %v2816_v25, %v749_v4 }
 0x132   : > { %v732_v3 = vpop.f32.mrf.mxu0  ;;  %1133 = vmatpush.bf16.msrb.mxu3 %v2010_v1  ;;  %v1954_v1 = vld [vmem:[#allocation13 + $0x68] sm:$0xf0] }
 0x133   : > { %v770_v8 = vmax.f32 %v750_v6, 0.0  ;;  %v733_v9 = vadd.f32 %v2816_v25, %v732_v3 }
 0x135   : > { %v779_v10 = vpack.c.bf16 %v770_v8, %v769_v5  ;;  %v763_v15 = vmax.f32 %v733_v9, 0.0 }
 0x136   : > { %1134 = vmatpush.bf16.msrb.mxu3 %v2009_v2 }
 0x137   : > { %887 = vmatmul.bf16.gmra.mxu3 %v779_v10  ;;  %v2008_v10 = vld [vmem:[#allocation11 + $0x18] sm:$0xff] }
 0x138   : > { %v752_v14 = vpop.f32.mrf.mxu2 }
 0x139   : > { %v753_v18 = vadd.f32 %v2816_v25, %v752_v14  ;;  %v2006_v14 = vld [vmem:[#allocation11 + $0x8] sm:$0xff] }
 0x13a   : > { %v734_v12 = vpop.f32.mrf.mxu0  ;;  %1135 = vmatpush.bf16.msrb.mxu3 %v2008_v10 }
 0x13b   : > { %v735_v13 = vadd.f32 %v2816_v25, %v734_v12  ;;  %v771_v20 = vmax.f32 %v753_v18, 0.0 }
 0x13d   : > { %v764_v16 = vmax.f32 %v735_v13, 0.0 }
 0x13e   : > { %1136 = vmatpush.bf16.msrb.mxu3 %v2007_v11  ;;  %v1952_v11 = vld [vmem:[#allocation13 + $0x60] sm:$0xf] }
 0x13f   : > { %v776_v17 = vpack.c.bf16 %v764_v16, %v763_v15 }
 0x140   : > { %v754_v19 = vpop.f32.mrf.mxu2 }
 0x141   : > { %872 = vmatmul.bf16.gmra.mxu1 %v776_v17  ;;  %v755_v21 = vadd.f32 %v2816_v25, %v754_v19 }
 0x142   : > { %1137 = vmatpush.bf16.msrb.mxu3 %v2006_v14 }
 0x143   : > { %v772_v22 = vmax.f32 %v755_v21, 0.0 }
 0x145   : > { %v780_v23 = vpack.c.bf16 %v772_v22, %v771_v20  ;;  %v2005_v22 = vld [vmem:[#allocation11] sm:$0xff] }
 0x146   : > { %1138 = vmatpush.bf16.msrb.mxu3 %v2005_v22  ;;  %v1944_v22 = vld [vmem:[#allocation13 + $0x50] sm:$0xf] }
 0x147   : > { %892 = vmatmul.bf16.gmra.mxu3 %v780_v23 }
 0x18e   : > { %v858_v26 = vpop.f32.mrf.mxu1 }
 0x18f   : > { %v859_v28 = vadd.f32 %v2834_v27, %v858_v26 }
 0x191   : > { %v898_v31 = vmax.f32 %v859_v28, 0.0 }
 0x196   : > { %v860_v29 = vpop.f32.mrf.mxu1 }
 0x197   : > { %v861_v30 = vadd.f32 %v2834_v27, %v860_v29  ;;  %v2855_v29 = vld [vmem:[%s3040_s6] ss:$0 sm:$0xff] }
 0x199   : > { %v899_v32 = vmax.f32 %v861_v30, 0.0 }
 0x19a   : > { %v878_v46 = vpop.f32.mrf.mxu3 }
 0x19b   : > { %v914_v33 = vpack.c.bf16 %v899_v32, %v898_v31  ;;  %v879_v59 = vadd.f32 %v2834_v27, %v878_v46 }
 0x19d   : > { %998 = vmatmul.bf16.vlgmr.msrb.gmra.mxu2 %v914_v33  ;;  %v906_v61 = vmax.f32 %v879_v59, 0.0 }
 0x19e   : > { %v863_v34 = vpop.f32.mrf.mxu1 }
 0x19f   : > { %v864_v25 = vadd.f32 %v2834_v27, %v863_v34 }
 0x1a1   : > { %v900_v37 = vmax.f32 %v864_v25, 0.0 }
 0x1a2   : > { %v880_v49 = vpop.f32.mrf.mxu3 }
 0x1a3   : > { %v881_v60 = vadd.f32 %v2834_v27, %v880_v49 }
 0x1a5   : > { %v907_v62 = vmax.f32 %v881_v60, 0.0 }
 0x1a6   : > { %v865_v35 = vpop.f32.mrf.mxu1 }
 0x1a7   : > { %v866_v36 = vadd.f32 %v2834_v27, %v865_v35  ;;  %v918_v0 = vpack.c.bf16 %v907_v62, %v906_v61 }
 0x1a9   : > { %v901_v38 = vmax.f32 %v866_v36, 0.0 }
 0x1aa   : > { %v883_v57 = vpop.f32.mrf.mxu3 }
 0x1ab   : > { %v915_v39 = vpack.c.bf16 %v901_v38, %v900_v37  ;;  %v884_v4 = vadd.f32 %v2834_v27, %v883_v57  ;;  %v1962_v57 = vld [vmem:[#allocation13 + $0x78] sm:$0xf0] }
 0x1ac   : > { %v1965_v58 = vor.u32 %v2027_v56, %v1962_v57  ;;  %v1912_v57 = vld [vmem:[#allocation13 + $0x10] sm:$0xf] }
 0x1ad   : > { %1003 = vmatmul.bf16.gmra.mxu2 %v915_v39  ;;  %v908_v6 = vmax.f32 %v884_v4, 0.0  ;;  %v2028_v4 = vld [vmem:[#allocation13 + $0x74] sm:$0xf0] }
 0x1ae   : > { %v868_v40 = vpop.f32.mrf.mxu1  ;;  %1355 = vmatpush.bf16.msrb.mxu1 %v1965_v58  ;;  %v2016_v58 = vld [vmem:[#allocation13 + $0x14] sm:$0xf0] }
 0x1af   : > { %v869_v41 = vadd.f32 %v2834_v27, %v868_v40 }
 0x1b1   : > { %v902_v44 = vmax.f32 %v869_v41, 0.0 }
 0x1b2   : > { %v885_v63 = vpop.f32.mrf.mxu3 }
 0x1b3   : > { %v886_v5 = vadd.f32 %v2834_v27, %v885_v63 }
 0x1b5   : > { %v909_v7 = vmax.f32 %v886_v5, 0.0 }
 0x1b6   : > { %v870_v42 = vpop.f32.mrf.mxu1 }
 0x1b7   : > { %v871_v43 = vadd.f32 %v2834_v27, %v870_v42  ;;  %v919_v8 = vpack.c.bf16 %v909_v7, %v908_v6 }
 0x1b9   : > { %v903_v45 = vmax.f32 %v871_v43, 0.0 }
 0x1ba   : > { %v888_v3 = vpop.f32.mrf.mxu3 }
 0x1bb   : > { %v916_v47 = vpack.c.bf16 %v903_v45, %v902_v44  ;;  %v889_v12 = vadd.f32 %v2834_v27, %v888_v3  ;;  %v1960_v3 = vld [vmem:[#allocation13 + $0x70] sm:$0xf] }
 0x1bc   : > { %v1961_v6 = vor.u32 %v2028_v4, %v1960_v3 }
 0x1bd   : > { %1008 = vmatmul.bf16.gmra.mxu2 %v916_v47  ;;  %v910_v16 = vmax.f32 %v889_v12, 0.0  ;;  %v2026_v12 = vld [vmem:[#allocation13 + $0x64] sm:$0xf0] }
 0x1be   : > { %v873_v48 = vpop.f32.mrf.mxu1  ;;  %1306 = vmatpush.bf16.msrb.mxu0 %v1961_v6 }
 0x1bf   : > { %v874_v50 = vadd.f32 %v2834_v27, %v873_v48 }
 0x1c1   : > { %v904_v53 = vmax.f32 %v874_v50, 0.0 }
 0x1c2   : > { %v890_v9 = vpop.f32.mrf.mxu3 }
 0x1c3   : > { %v891_v13 = vadd.f32 %v2834_v27, %v890_v9  ;;  %v1946_v9 = vld [vmem:[#allocation13 + $0x58] sm:$0xf0] }
 0x1c5   : > { %v911_v17 = vmax.f32 %v891_v13, 0.0  ;;  %v1953_v13 = vor.u32 %v2026_v12, %v1952_v11 }
 0x1c6   : > { %v875_v51 = vpop.f32.mrf.mxu1 }
 0x1c7   : > { %v876_v52 = vadd.f32 %v2834_v27, %v875_v51  ;;  %v920_v18 = vpack.c.bf16 %v911_v17, %v910_v16  ;;  %1307 = vmatpush.bf16.msrb.mxu0 %v1953_v13 }
 0x1c9   : > { %v905_v54 = vmax.f32 %v876_v52, 0.0 }
 0x1ca   : > { %v893_v15 = vpop.f32.mrf.mxu3 }
 0x1cb   : > { %v917_v55 = vpack.c.bf16 %v905_v54, %v904_v53  ;;  %v894_v20 = vadd.f32 %v2834_v27, %v893_v15 }
 0x1cd   : > { %1013 = vmatmul.bf16.gmra.mxu2 %v917_v55  ;;  %v912_v23 = vmax.f32 %v894_v20, 0.0  ;;  %v1938_v20 = vld [vmem:[#allocation13 + $0x48] sm:$0xf0] }
 0x1d2   : > { %v895_v19 = vpop.f32.mrf.mxu3 }
 0x1d3   : > { %v896_v21 = vadd.f32 %v2834_v27, %v895_v19  ;;  %v2021_v19 = vld [vmem:[#allocation13 + $0x44] sm:$0xf] }
 0x1d5   : > { %v913_v24 = vmax.f32 %v896_v21, 0.0  ;;  %v1941_v21 = vor.u32 %v2021_v19, %v1938_v20 }
 0x1d7   : > { %v921_v26 = vpack.c.bf16 %v913_v24, %v912_v23  ;;  %v2024_v23 = vld [vmem:[#allocation13 + $0x54] sm:$0xf0] }
 0x1dd   : > { %1018 = vmatmul.bf16.gmra.mxu2 %v918_v0  ;;  %v2025_v0 = vld [vmem:[#allocation13 + $0x64] sm:$0xf] }
 0x1de   : > { %v1957_v2 = vor.u32 %v2025_v0, %v1954_v1  ;;  %v1904_v0 = vld [vmem:[#allocation13] sm:$0xf]  ;;  %v2014_v1 = vld [vmem:[#allocation13 + $0x4] sm:$0xf0] }
 0x1e0   : > { %1356 = vmatpush.bf16.msrb.mxu1 %v1957_v2  ;;  %v1905_v2 = vor.u32 %v2014_v1, %v1904_v0 }
 0x1ed   : > { %1023 = vmatmul.bf16.gmra.mxu2 %v919_v8  ;;  %v2023_v8 = vld [vmem:[#allocation13 + $0x54] sm:$0xf] }
 0x1ee   : > { %v1949_v10 = vor.u32 %v2023_v8, %v1946_v9 }
 0x1f0   : > { %1357 = vmatpush.bf16.msrb.mxu1 %v1949_v10 }
 0x1f4   : > { %1358 = vmatpush.bf16.msrb.mxu1 %v1941_v21 }
 0x1fd   : > { %1028 = vmatmul.bf16.gmra.mxu2 %v920_v18 }
 0x20d   : > { %1033 = vmatmul.bf16.gmra.mxu2 %v921_v26  ;;  %v1945_v26 = vor.u32 %v2024_v23, %v1944_v22 }
 0x20f   : > { %1308 = vmatpush.bf16.msrb.mxu0 %v1945_v26 }
 0x220   : > { %v999_v28 = vpop.f32.mrf.mxu2 }
 0x221   : > { %v1000_v30 = vadd.f32 %v2855_v29, %v999_v28  ;;  %v2019_v28 = vld [vmem:[#allocation13 + $0x34] sm:$0xf] }
 0x223   : > { %v1039_v33 = vmax.f32 %v1000_v30, 0.0  ;;  %v1930_v30 = vld [vmem:[#allocation13 + $0x38] sm:$0xf0] }
 0x228   : > { %v1001_v31 = vpop.f32.mrf.mxu2 }
 0x229   : > { %v1002_v32 = vadd.f32 %v2855_v29, %v1001_v31  ;;  %v1936_v31 = vld [vmem:[#allocation13 + $0x40] sm:$0xf] }
 0x22b   : > { %v1040_v34 = vmax.f32 %v1002_v32, 0.0 }
 0x22d   : > { %v1055_v27 = vpack.c.bf16 %v1040_v34, %v1039_v33  ;;  %v1933_v33 = vor.u32 %v2019_v28, %v1930_v30  ;;  %v2022_v34 = vld [vmem:[#allocation13 + $0x44] sm:$0xf0] }
 0x22f   : > { %1139 = vmatmul.bf16.vlgmr.msrb.gmra.mxu3 %v1055_v27  ;;  %v2017_v27 = vld [vmem:[#allocation13 + $0x24] sm:$0xf]  ;;  %1359 = vmatpush.bf16.msrb.mxu1 %v1933_v33 }
 0x230   : > { %v1004_v25 = vpop.f32.mrf.mxu2 }
 0x231   : > { %v1005_v35 = vadd.f32 %v2855_v29, %v1004_v25  ;;  %v1922_v25 = vld [vmem:[#allocation13 + $0x28] sm:$0xf0] }
 0x233   : > { %v1041_v38 = vmax.f32 %v1005_v35, 0.0  ;;  %v1937_v35 = vor.u32 %v2022_v34, %v1936_v31 }
 0x235   : > { %1309 = vmatpush.bf16.msrb.mxu0 %v1937_v35 }
 0x238   : > { %v1006_v36 = vpop.f32.mrf.mxu2 }
 0x239   : > { %v1007_v37 = vadd.f32 %v2855_v29, %v1006_v36  ;;  %v1928_v36 = vld [vmem:[#allocation13 + $0x30] sm:$0xf] }
 0x23b   : > { %v1042_v39 = vmax.f32 %v1007_v37, 0.0  ;;  %v2020_v37 = vld [vmem:[#allocation13 + $0x34] sm:$0xf0] }
 0x23d   : > { %v1056_v40 = vpack.c.bf16 %v1042_v39, %v1041_v38  ;;  %v1925_v38 = vor.u32 %v2017_v27, %v1922_v25  ;;  %v1929_v39 = vor.u32 %v2020_v37, %v1928_v36 }
 0x23f   : > { %1144 = vmatmul.bf16.gmra.mxu3 %v1056_v40  ;;  %v2015_v40 = vld [vmem:[#allocation13 + $0x14] sm:$0xf]  ;;  %1360 = vmatpush.bf16.msrb.mxu1 %v1925_v38 }
 0x240   : > { %v1009_v41 = vpop.f32.mrf.mxu2  ;;  %1310 = vmatpush.bf16.msrb.mxu0 %v1929_v39 }
 0x241   : > { %v1010_v42 = vadd.f32 %v2855_v29, %v1009_v41  ;;  %v1914_v41 = vld [vmem:[#allocation13 + $0x18] sm:$0xf0] }
 0x243   : > { %v1043_v45 = vmax.f32 %v1010_v42, 0.0  ;;  %v1917_v42 = vor.u32 %v2015_v40, %v1914_v41 }
 0x245   : > { %1361 = vmatpush.bf16.msrb.mxu1 %v1917_v42 }
 0x248   : > { %v1011_v43 = vpop.f32.mrf.mxu2 }
 0x249   : > { %v1012_v44 = vadd.f32 %v2855_v29, %v1011_v43 }
 0x24b   : > { %v1044_v46 = vmax.f32 %v1012_v44, 0.0 }
 0x24d   : > { %v1057_v47 = vpack.c.bf16 %v1044_v46, %v1043_v45 }
 0x24f   : > { %1149 = vmatmul.bf16.gmra.mxu3 %v1057_v47 }
 0x250   : > { %v1014_v48 = vpop.f32.mrf.mxu2 }
 0x251   : > { %v1015_v49 = vadd.f32 %v2855_v29, %v1014_v48 }
 0x253   : > { %v1045_v52 = vmax.f32 %v1015_v49, 0.0 }
 0x258   : > { %v1016_v50 = vpop.f32.mrf.mxu2 }
 0x259   : > { %v1017_v51 = vadd.f32 %v2855_v29, %v1016_v50  ;;  %v1920_v50 = vld [vmem:[#allocation13 + $0x20] sm:$0xf] }
 0x25b   : > { %v1046_v53 = vmax.f32 %v1017_v51, 0.0  ;;  %v2018_v51 = vld [vmem:[#allocation13 + $0x24] sm:$0xf0] }
 0x25d   : > { %v1058_v54 = vpack.c.bf16 %v1046_v53, %v1045_v52  ;;  %v1921_v52 = vor.u32 %v2018_v51, %v1920_v50  ;;  %v2013_v53 = vld [vmem:[#allocation13 + $0x4] sm:$0xf] }
 0x25f   : > { %1154 = vmatmul.bf16.gmra.mxu3 %v1058_v54  ;;  %v1906_v54 = vld [vmem:[#allocation13 + $0x8] sm:$0xf0]  ;;  %1311 = vmatpush.bf16.msrb.mxu0 %v1921_v52 }
 0x260   : > { %v1019_v55 = vpop.f32.mrf.mxu2 }
 0x261   : > { %v1020_v59 = vadd.f32 %v2855_v29, %v1019_v55  ;;  %v1909_v55 = vor.u32 %v2013_v53, %v1906_v54 }
 0x263   : > { %v1047_v62 = vmax.f32 %v1020_v59, 0.0  ;;  %1362 = vmatpush.bf16.msrb.mxu1 %v1909_v55 }
 0x268   : > { %v1021_v60 = vpop.f32.mrf.mxu2 }
 0x269   : > { %v1022_v61 = vadd.f32 %v2855_v29, %v1021_v60  ;;  %v1913_v60 = vor.u32 %v2016_v58, %v1912_v57 }
 0x26b   : > { %v1048_v63 = vmax.f32 %v1022_v61, 0.0  ;;  %1312 = vmatpush.bf16.msrb.mxu0 %v1913_v60 }
 0x26d   : > { %v1059_v5 = vpack.c.bf16 %v1048_v63, %v1047_v62 }
 0x26f   : > { %1159 = vmatmul.bf16.gmra.mxu3 %v1059_v5  ;;  %1313 = vmatpush.bf16.msrb.mxu0 %v1905_v2  ;;  %v2876_v5 = vld [vmem:[%s3042_s8] ss:$0 sm:$0xff] }
 0x270   : > { %v1024_v7 = vpop.f32.mrf.mxu2 }
 0x271   : > { %v1025_v14 = vadd.f32 %v2855_v29, %v1024_v7 }
 0x273   : > { %v1049_v17 = vmax.f32 %v1025_v14, 0.0 }
 0x278   : > { %v1026_v15 = vpop.f32.mrf.mxu2 }
 0x279   : > { %v1027_v16 = vadd.f32 %v2855_v29, %v1026_v15 }
 0x27b   : > { %v1050_v18 = vmax.f32 %v1027_v16, 0.0 }
 0x27d   : > { %v1060_v24 = vpack.c.bf16 %v1050_v18, %v1049_v17 }
 0x27f   : > { %1164 = vmatmul.bf16.gmra.mxu3 %v1060_v24 }
 0x280   : > { %v1029_v32 = vpop.f32.mrf.mxu2 }
 0x281   : > { %v1030_v43 = vadd.f32 %v2855_v29, %v1029_v32 }
 0x283   : > { %v1051_v46 = vmax.f32 %v1030_v43, 0.0 }
 0x288   : > { %v1031_v44 = vpop.f32.mrf.mxu2 }
 0x289   : > { %v1032_v45 = vadd.f32 %v2855_v29, %v1031_v44 }
 0x28b   : > { %v1052_v47 = vmax.f32 %v1032_v45, 0.0 }
 0x28d   : > { %v1061_v48 = vpack.c.bf16 %v1052_v47, %v1051_v46 }
 0x28f   : > { %1169 = vmatmul.bf16.gmra.mxu3 %v1061_v48 }
 0x290   : > { %v1034_v49 = vpop.f32.mrf.mxu2 }
 0x291   : > { %v1035_v56 = vadd.f32 %v2855_v29, %v1034_v49 }
 0x293   : > { %v1053_v62 = vmax.f32 %v1035_v56, 0.0 }
 0x298   : > { %v1036_v59 = vpop.f32.mrf.mxu2 }
 0x299   : > { %v1037_v61 = vadd.f32 %v2855_v29, %v1036_v59 }
 0x29b   : > { %v1054_v63 = vmax.f32 %v1037_v61, 0.0  ;;  %v1220_v61 = vld [vmem:[%s3044_s10] sm:$0x3] }
 0x29d   : > { %v1062_v3 = vpack.c.bf16 %v1054_v63, %v1053_v62  ;;  %v2898_v62 = vperm.slane %v1220_v61, 0  ;;  %v2900_v63 = vperm.slane %v1220_v61, 1 }
 0x29f   : > { %1174 = vmatmul.bf16.gmra.mxu3 %v1062_v3 }
 0x2b2   : > { %v1140_v4 = vpop.f32.mrf.mxu3 }
 0x2b3   : > { %v1141_v6 = vadd.f32 %v2876_v5, %v1140_v4 }
 0x2b5   : > { %v1180_v8 = vmax.f32 %v1141_v6, 0.0 }
 0x2ba   : > { %v1142_v7 = vpop.f32.mrf.mxu3 }
 0x2bb   : > { %v1143_v29 = vadd.f32 %v2876_v5, %v1142_v7 }
 0x2bd   : > { %v1181_v9 = vmax.f32 %v1143_v29, 0.0 }
 0x2bf   : > { %v1196_v10 = vpack.c.bf16 %v1181_v9, %v1180_v8  ;;  %v1404_v9 = vld [vmem:[%s2799_s25] sm:$0xff] }
 0x2c1   : > { %1314 = vmatmul.bf16.vlgmr.msrb.gmra.mxu0 %v1196_v10  ;;  %1363 = vmatmul.bf16.vlgmr.msrb.gmra.mxu1 %v1196_v10 }
 0x2c2   : > { %v1145_v11 = vpop.f32.mrf.mxu3 }
 0x2c3   : > { %v1146_v12 = vadd.f32 %v2876_v5, %v1145_v11 }
 0x2c5   : > { %v1182_v15 = vmax.f32 %v1146_v12, 0.0 }
 0x2ca   : > { %v1147_v13 = vpop.f32.mrf.mxu3 }
 0x2cb   : > { %v1148_v14 = vadd.f32 %v2876_v5, %v1147_v13 }
 0x2cd   : > { %v1183_v16 = vmax.f32 %v1148_v14, 0.0 }
 0x2cf   : > { %v1197_v17 = vpack.c.bf16 %v1183_v16, %v1182_v15 }
 0x2d1   : > { %1319 = vmatmul.bf16.gmra.mxu0 %v1197_v17  ;;  %1368 = vmatmul.bf16.gmra.mxu1 %v1197_v17 }
 0x2d2   : > { %v1150_v18 = vpop.f32.mrf.mxu3 }
 0x2d3   : > { %v1151_v19 = vadd.f32 %v2876_v5, %v1150_v18 }
 0x2d5   : > { %v1184_v22 = vmax.f32 %v1151_v19, 0.0  ;;  %v1405_v19 = vld [vmem:[%s2799_s25 + $0x8] sm:$0xff] }
 0x2da   : > { %v1152_v20 = vpop.f32.mrf.mxu3 }
 0x2db   : > { %v1153_v21 = vadd.f32 %v2876_v5, %v1152_v20 }
 0x2dd   : > { %v1185_v23 = vmax.f32 %v1153_v21, 0.0 }
 0x2df   : > { %v1198_v24 = vpack.c.bf16 %v1185_v23, %v1184_v22 }
 0x2e1   : > { %1324 = vmatmul.bf16.gmra.mxu0 %v1198_v24  ;;  %1373 = vmatmul.bf16.gmra.mxu1 %v1198_v24 }
 0x2e2   : > { %v1155_v26 = vpop.f32.mrf.mxu3 }
 0x2e3   : > { %v1156_v28 = vadd.f32 %v2876_v5, %v1155_v26 }
 0x2e5   : > { %v1186_v32 = vmax.f32 %v1156_v28, 0.0 }
 0x2ea   : > { %v1157_v30 = vpop.f32.mrf.mxu3 }
 0x2eb   : > { %v1158_v31 = vadd.f32 %v2876_v5, %v1157_v30 }
 0x2ed   : > { %v1187_v33 = vmax.f32 %v1158_v31, 0.0 }
 0x2ef   : > { %v1199_v34 = vpack.c.bf16 %v1187_v33, %v1186_v32  ;;  %v1406_v32 = vld [vmem:[%s2799_s25 + $0x10] sm:$0xff] }
 0x2f1   : > { %1329 = vmatmul.bf16.gmra.mxu0 %v1199_v34  ;;  %1378 = vmatmul.bf16.gmra.mxu1 %v1199_v34 }
 0x2f2   : > { %v1160_v27 = vpop.f32.mrf.mxu3 }
 0x2f3   : > { %v1161_v25 = vadd.f32 %v2876_v5, %v1160_v27 }
 0x2f5   : > { %v1188_v37 = vmax.f32 %v1161_v25, 0.0 }
 0x2fa   : > { %v1162_v35 = vpop.f32.mrf.mxu3 }
 0x2fb   : > { %v1163_v36 = vadd.f32 %v2876_v5, %v1162_v35 }
 0x2fd   : > { %v1189_v38 = vmax.f32 %v1163_v36, 0.0 }
 0x2ff   : > { %v1200_v39 = vpack.c.bf16 %v1189_v38, %v1188_v37 }
 0x301   : > { %1334 = vmatmul.bf16.gmra.mxu0 %v1200_v39  ;;  %1383 = vmatmul.bf16.gmra.mxu1 %v1200_v39 }
 0x302   : > { %v1165_v40 = vpop.f32.mrf.mxu3 }
 0x303   : > { %v1166_v41 = vadd.f32 %v2876_v5, %v1165_v40  ;;  %v1407_v40 = vld [vmem:[%s2799_s25 + $0x18] sm:$0xff] }
 0x305   : > { %v1190_v44 = vmax.f32 %v1166_v41, 0.0 }
 0x30a   : > { %v1167_v42 = vpop.f32.mrf.mxu3 }
 0x30b   : > { %v1168_v43 = vadd.f32 %v2876_v5, %v1167_v42 }
 0x30d   : > { %v1191_v45 = vmax.f32 %v1168_v43, 0.0 }
 0x30f   : > { %v1201_v46 = vpack.c.bf16 %v1191_v45, %v1190_v44 }
 0x311   : > { %1339 = vmatmul.bf16.gmra.mxu0 %v1201_v46  ;;  %1388 = vmatmul.bf16.gmra.mxu1 %v1201_v46 }
 0x312   : > { %v1170_v47 = vpop.f32.mrf.mxu3 }
 0x313   : > { %v1171_v48 = vadd.f32 %v2876_v5, %v1170_v47 }
 0x315   : > { %v1192_v51 = vmax.f32 %v1171_v48, 0.0 }
 0x31a   : > { %v1172_v49 = vpop.f32.mrf.mxu3 }
 0x31b   : > { %v1173_v50 = vadd.f32 %v2876_v5, %v1172_v49 }
 0x31d   : > { %v1193_v52 = vmax.f32 %v1173_v50, 0.0  ;;  %v1408_v50 = vld [vmem:[%s2799_s25 + $0x20] sm:$0xff] }
 0x31f   : > { %v1202_v53 = vpack.c.bf16 %v1193_v52, %v1192_v51 }
 0x321   : > { %1344 = vmatmul.bf16.gmra.mxu0 %v1202_v53  ;;  %1393 = vmatmul.bf16.gmra.mxu1 %v1202_v53 }
 0x322   : > { %v1175_v54 = vpop.f32.mrf.mxu3 }
 0x323   : > { %v1176_v55 = vadd.f32 %v2876_v5, %v1175_v54 }
 0x325   : > { %v1194_v58 = vmax.f32 %v1176_v55, 0.0 }
 0x32a   : > { %v1177_v56 = vpop.f32.mrf.mxu3 }
 0x32b   : > { %v1178_v57 = vadd.f32 %v2876_v5, %v1177_v56 }
 0x32d   : > { %v1195_v59 = vmax.f32 %v1178_v57, 0.0 }
 0x32f   : > { %v1203_v60 = vpack.c.bf16 %v1195_v59, %v1194_v58 }
 0x331   : > { %1349 = vmatmul.bf16.gmra.mxu0 %v1203_v60  ;;  %1398 = vmatmul.bf16.gmra.mxu1 %v1203_v60  ;;  %v1409_v60 = vld [vmem:[%s2799_s25 + $0x28] sm:$0xff] }
 0x33e   : > { %v1315_v0 = vpop.f32.mrf.mxu0  ;;  %v1364_v1 = vpop.f32.mrf.mxu1 }
 0x33f   : > { %v1316_v2 = vadd.f32 %v1315_v0, %v2898_v62  ;;  %v1365_v3 = vadd.f32 %v1364_v1, %v2900_v63 }
 0x341   : > { %1516 = vst [vmem:[%s2904_s30 + $0x8] sm:$0xff] %v1316_v2  ;;  %v1420_v4 = vmul.f32 0.5, %v1365_v3 }
 0x342   : > { %1532 = vst [vmem:[%s2904_s30 + $0x10] sm:$0xff] %v1365_v3 }
 0x343   : > { %v1436_v5 = vmul.f32 1.442695, %v1420_v4 }
 0x345   : > { %2169 = vpow2.f32 %v1436_v5 }
 0x346   : > { %v1317_v6 = vpop.f32.mrf.mxu0  ;;  %v1366_v7 = vpop.f32.mrf.mxu1 }
 0x347   : > { %v1318_v29 = vadd.f32 %v1317_v6, %v2898_v62  ;;  %v1367_v8 = vadd.f32 %v1366_v7, %v2900_v63 }
 0x349   : > { %1517 = vst [vmem:[%s2904_s30 + $0x20] sm:$0xff] %v1318_v29  ;;  %v1421_v10 = vmul.f32 0.5, %v1367_v8 }
 0x34a   : > { %1533 = vst [vmem:[%s2904_s30 + $0x28] sm:$0xff] %v1367_v8 }
 0x34b   : > { %v2170_v11 = vpop.eup %2169  ;;  %v1438_v12 = vmul.f32 1.442695, %v1421_v10 }
 0x34c   : > { %v1468_v13 = vmul.f32 %v2170_v11, %v1404_v9 }
 0x34d   : > { %2171 = vpow2.f32 %v1438_v12 }
 0x34e   : > { %v1484_v14 = vadd.f32 %v1468_v13, %v1316_v2  ;;  %v1320_v15 = vpop.f32.mrf.mxu0  ;;  %v1369_v16 = vpop.f32.mrf.mxu1 }
 0x34f   : > { %v1321_v17 = vadd.f32 %v1320_v15, %v2898_v62  ;;  %v1370_v18 = vadd.f32 %v1369_v16, %v2900_v63 }
 0x350   : > { %1500 = vst [vmem:[%s2904_s30] sm:$0xff] %v1484_v14 }
 0x351   : > { %1518 = vst [vmem:[%s2904_s30 + $0x38] sm:$0xff] %v1321_v17  ;;  %v1422_v20 = vmul.f32 0.5, %v1370_v18 }
 0x352   : > { %1534 = vst [vmem:[%s2904_s30 + $0x40] sm:$0xff] %v1370_v18 }
 0x353   : > { %v2172_v21 = vpop.eup %2171  ;;  %v1440_v22 = vmul.f32 1.442695, %v1422_v20 }
 0x354   : > { %v1469_v23 = vmul.f32 %v2172_v21, %v1405_v19 }
 0x355   : > { %2173 = vpow2.f32 %v1440_v22 }
 0x356   : > { %v1485_v24 = vadd.f32 %v1469_v23, %v1318_v29  ;;  %v1322_v26 = vpop.f32.mrf.mxu0  ;;  %v1371_v28 = vpop.f32.mrf.mxu1  ;;  %v1410_v29 = vld [vmem:[%s2799_s25 + $0x30] sm:$0xff] }
 0x357   : > { %v1323_v30 = vadd.f32 %v1322_v26, %v2898_v62  ;;  %v1372_v31 = vadd.f32 %v1371_v28, %v2900_v63 }
 0x358   : > { %1501 = vst [vmem:[%s2904_s30 + $0x18] sm:$0xff] %v1485_v24 }
 0x359   : > { %1519 = vst [vmem:[%s2904_s30 + $0x50] sm:$0xff] %v1323_v30  ;;  %v1423_v33 = vmul.f32 0.5, %v1372_v31 }
 0x35a   : > { %1535 = vst [vmem:[%s2904_s30 + $0x58] sm:$0xff] %v1372_v31 }
 0x35b   : > { %v2174_v34 = vpop.eup %2173  ;;  %v1442_v27 = vmul.f32 1.442695, %v1423_v33 }
 0x35c   : > { %v1470_v25 = vmul.f32 %v2174_v34, %v1406_v32 }
 0x35d   : > { %2175 = vpow2.f32 %v1442_v27 }
 0x35e   : > { %v1486_v35 = vadd.f32 %v1470_v25, %v1321_v17  ;;  %v1325_v36 = vpop.f32.mrf.mxu0  ;;  %v1374_v37 = vpop.f32.mrf.mxu1  ;;  %v1411_v17 = vld [vmem:[%s2799_s25 + $0x38] sm:$0xff] }
 0x35f   : > { %v1326_v38 = vadd.f32 %v1325_v36, %v2898_v62  ;;  %v1375_v39 = vadd.f32 %v1374_v37, %v2900_v63 }
 0x360   : > { %1502 = vst [vmem:[%s2904_s30 + $0x30] sm:$0xff] %v1486_v35 }
 0x361   : > { %1520 = vst [vmem:[%s2904_s30 + $0x68] sm:$0xff] %v1326_v38  ;;  %v1424_v41 = vmul.f32 0.5, %v1375_v39 }
 0x362   : > { %1536 = vst [vmem:[%s2904_s30 + $0x70] sm:$0xff] %v1375_v39 }
 0x363   : > { %v2176_v42 = vpop.eup %2175  ;;  %v1444_v43 = vmul.f32 1.442695, %v1424_v41 }
 0x364   : > { %v1471_v44 = vmul.f32 %v2176_v42, %v1407_v40 }
 0x365   : > { %2177 = vpow2.f32 %v1444_v43 }
 0x366   : > { %v1487_v45 = vadd.f32 %v1471_v44, %v1323_v30  ;;  %v1327_v46 = vpop.f32.mrf.mxu0  ;;  %v1376_v47 = vpop.f32.mrf.mxu1  ;;  %v1412_v30 = vld [vmem:[%s2799_s25 + $0x40] sm:$0xff] }
 0x367   : > { %v1328_v48 = vadd.f32 %v1327_v46, %v2898_v62  ;;  %v1377_v49 = vadd.f32 %v1376_v47, %v2900_v63 }
 0x368   : > { %1503 = vst [vmem:[%s2904_s30 + $0x48] sm:$0xff] %v1487_v45 }
 0x369   : > { %1521 = vst [vmem:[%s2904_s30 + $0x80] sm:$0xff] %v1328_v48  ;;  %v1425_v51 = vmul.f32 0.5, %v1377_v49 }
 0x36a   : > { %1537 = vst [vmem:[%s2904_s30 + $0x88] sm:$0xff] %v1377_v49 }
 0x36b   : > { %v2178_v52 = vpop.eup %2177  ;;  %v1446_v53 = vmul.f32 1.442695, %v1425_v51 }
 0x36c   : > { %v1472_v54 = vmul.f32 %v2178_v52, %v1408_v50 }
 0x36d   : > { %2179 = vpow2.f32 %v1446_v53 }
 0x36e   : > { %v1488_v55 = vadd.f32 %v1472_v54, %v1326_v38  ;;  %v1330_v56 = vpop.f32.mrf.mxu0  ;;  %v1379_v57 = vpop.f32.mrf.mxu1  ;;  %v1413_v38 = vld [vmem:[%s2799_s25 + $0x48] sm:$0xff] }
 0x36f   : > { %v1331_v58 = vadd.f32 %v1330_v56, %v2898_v62  ;;  %v1380_v59 = vadd.f32 %v1379_v57, %v2900_v63 }
 0x370   : > { %1504 = vst [vmem:[%s2904_s30 + $0x60] sm:$0xff] %v1488_v55 }
 0x371   : > { %1522 = vst [vmem:[%s2904_s30 + $0x98] sm:$0xff] %v1331_v58  ;;  %v1426_v61 = vmul.f32 0.5, %v1380_v59 }
 0x372   : > { %1538 = vst [vmem:[%s2904_s30 + $0xa0] sm:$0xff] %v1380_v59 }
 0x373   : > { %v2180_v0 = vpop.eup %2179  ;;  %v1448_v1 = vmul.f32 1.442695, %v1426_v61 }
 0x374   : > { %v1473_v2 = vmul.f32 %v2180_v0, %v1409_v60 }
 0x375   : > { %2181 = vpow2.f32 %v1448_v1 }
 0x376   : > { %v1489_v3 = vadd.f32 %v1473_v2, %v1328_v48  ;;  %v1332_v4 = vpop.f32.mrf.mxu0  ;;  %v1381_v5 = vpop.f32.mrf.mxu1  ;;  %v1414_v48 = vld [vmem:[%s2799_s25 + $0x50] sm:$0xff] }
 0x377   : > { %v1333_v6 = vadd.f32 %v1332_v4, %v2898_v62  ;;  %v1382_v7 = vadd.f32 %v1381_v5, %v2900_v63 }
 0x378   : > { %1505 = vst [vmem:[%s2904_s30 + $0x78] sm:$0xff] %v1489_v3 }
 0x379   : > { %1523 = vst [vmem:[%s2904_s30 + $0xb0] sm:$0xff] %v1333_v6  ;;  %v1427_v8 = vmul.f32 0.5, %v1382_v7 }
 0x37a   : > { %1539 = vst [vmem:[%s2904_s30 + $0xb8] sm:$0xff] %v1382_v7 }
 0x37b   : > { %v2182_v9 = vpop.eup %2181  ;;  %v1450_v10 = vmul.f32 1.442695, %v1427_v8 }
 0x37c   : > { %v1474_v11 = vmul.f32 %v2182_v9, %v1410_v29 }
 0x37d   : > { %2183 = vpow2.f32 %v1450_v10 }
 0x37e   : > { %v1490_v12 = vadd.f32 %v1474_v11, %v1331_v58  ;;  %v1335_v13 = vpop.f32.mrf.mxu0  ;;  %v1384_v14 = vpop.f32.mrf.mxu1  ;;  %v1415_v58 = vld [vmem:[%s2799_s25 + $0x58] sm:$0xff] }
 0x37f   : > { %v1336_v15 = vadd.f32 %v1335_v13, %v2898_v62  ;;  %v1385_v16 = vadd.f32 %v1384_v14, %v2900_v63 }
 0x380   : > { %1506 = vst [vmem:[%s2904_s30 + $0x90] sm:$0xff] %v1490_v12 }
 0x381   : > { %1524 = vst [vmem:[%s2904_s30 + $0xc8] sm:$0xff] %v1336_v15  ;;  %v1428_v18 = vmul.f32 0.5, %v1385_v16 }
 0x382   : > { %1540 = vst [vmem:[%s2904_s30 + $0xd0] sm:$0xff] %v1385_v16 }
 0x383   : > { %v2184_v19 = vpop.eup %2183  ;;  %v1452_v20 = vmul.f32 1.442695, %v1428_v18 }
 0x384   : > { %v1475_v21 = vmul.f32 %v2184_v19, %v1411_v17 }
 0x385   : > { %2185 = vpow2.f32 %v1452_v20 }
 0x386   : > { %v1491_v22 = vadd.f32 %v1475_v21, %v1333_v6  ;;  %v1337_v23 = vpop.f32.mrf.mxu0  ;;  %v1386_v24 = vpop.f32.mrf.mxu1  ;;  %v1416_v6 = vld [vmem:[%s2799_s25 + $0x60] sm:$0xff] }
 0x387   : > { %v1338_v26 = vadd.f32 %v1337_v23, %v2898_v62  ;;  %v1387_v28 = vadd.f32 %v1386_v24, %v2900_v63 }
 0x388   : > { %1507 = vst [vmem:[%s2904_s30 + $0xa8] sm:$0xff] %v1491_v22 }
 0x389   : > { %1525 = vst [vmem:[%s2904_s30 + $0xe0] sm:$0xff] %v1338_v26  ;;  %v1429_v31 = vmul.f32 0.5, %v1387_v28 }
 0x38a   : > { %1541 = vst [vmem:[%s2904_s30 + $0xe8] sm:$0xff] %v1387_v28 }
 0x38b   : > { %v2186_v32 = vpop.eup %2185  ;;  %v1454_v33 = vmul.f32 1.442695, %v1429_v31 }
 0x38c   : > { %v1476_v34 = vmul.f32 %v2186_v32, %v1412_v30 }
 0x38d   : > { %2187 = vpow2.f32 %v1454_v33 }
 0x38e   : > { %v1492_v27 = vadd.f32 %v1476_v34, %v1336_v15  ;;  %v1340_v25 = vpop.f32.mrf.mxu0  ;;  %v1389_v35 = vpop.f32.mrf.mxu1  ;;  %v1417_v15 = vld [vmem:[%s2799_s25 + $0x68] sm:$0xff] }
 0x38f   : > { %v1341_v36 = vadd.f32 %v1340_v25, %v2898_v62  ;;  %v1390_v37 = vadd.f32 %v1389_v35, %v2900_v63 }
 0x390   : > { %1508 = vst [vmem:[%s2904_s30 + $0xc0] sm:$0xff] %v1492_v27 }
 0x391   : > { %1526 = vst [vmem:[%s2904_s30 + $0xf8] sm:$0xff] %v1341_v36  ;;  %v1430_v39 = vmul.f32 0.5, %v1390_v37 }
 0x392   : > { %1542 = vst [vmem:[%s2904_s30 + $0x100] sm:$0xff] %v1390_v37 }
 0x393   : > { %v2188_v40 = vpop.eup %2187  ;;  %v1456_v41 = vmul.f32 1.442695, %v1430_v39 }
 0x394   : > { %v1477_v42 = vmul.f32 %v2188_v40, %v1413_v38 }
 0x395   : > { %2189 = vpow2.f32 %v1456_v41 }
 0x396   : > { %v1493_v43 = vadd.f32 %v1477_v42, %v1338_v26  ;;  %v1342_v44 = vpop.f32.mrf.mxu0  ;;  %v1391_v45 = vpop.f32.mrf.mxu1  ;;  %v1418_v26 = vld [vmem:[%s2799_s25 + $0x70] sm:$0xff] }
 0x397   : > { %v1343_v46 = vadd.f32 %v1342_v44, %v2898_v62  ;;  %v1392_v47 = vadd.f32 %v1391_v45, %v2900_v63 }
 0x398   : > { %1509 = vst [vmem:[%s2904_s30 + $0xd8] sm:$0xff] %v1493_v43 }
 0x399   : > { %1527 = vst [vmem:[%s2904_s30 + $0x110] sm:$0xff] %v1343_v46  ;;  %v1431_v49 = vmul.f32 0.5, %v1392_v47 }
 0x39a   : > { %1543 = vst [vmem:[%s2904_s30 + $0x118] sm:$0xff] %v1392_v47 }
 0x39b   : > { %v2190_v50 = vpop.eup %2189  ;;  %v1458_v51 = vmul.f32 1.442695, %v1431_v49 }
 0x39c   : > { %v1478_v52 = vmul.f32 %v2190_v50, %v1414_v48 }
 0x39d   : > { %2191 = vpow2.f32 %v1458_v51 }
 0x39e   : > { %v1494_v53 = vadd.f32 %v1478_v52, %v1341_v36  ;;  %v1345_v54 = vpop.f32.mrf.mxu0  ;;  %v1394_v55 = vpop.f32.mrf.mxu1 }
 0x39f   : > { %v1346_v56 = vadd.f32 %v1345_v54, %v2898_v62  ;;  %v1395_v57 = vadd.f32 %v1394_v55, %v2900_v63 }
 0x3a0   : > { %1510 = vst [vmem:[%s2904_s30 + $0xf0] sm:$0xff] %v1494_v53 }
 0x3a1   : > { %1528 = vst [vmem:[%s2904_s30 + $0x128] sm:$0xff] %v1346_v56  ;;  %v1432_v59 = vmul.f32 0.5, %v1395_v57 }
 0x3a2   : > { %1544 = vst [vmem:[%s2904_s30 + $0x130] sm:$0xff] %v1395_v57 }
 0x3a3   : > { %v2192_v60 = vpop.eup %2191  ;;  %v1460_v61 = vmul.f32 1.442695, %v1432_v59 }
 0x3a4   : > { %v1479_v0 = vmul.f32 %v2192_v60, %v1415_v58 }
 0x3a5   : > { %2193 = vpow2.f32 %v1460_v61 }
 0x3a6   : > { %v1495_v1 = vadd.f32 %v1479_v0, %v1343_v46  ;;  %v1347_v2 = vpop.f32.mrf.mxu0  ;;  %v1396_v3 = vpop.f32.mrf.mxu1 }
 0x3a7   : > { %v1348_v4 = vadd.f32 %v1347_v2, %v2898_v62  ;;  %v1397_v5 = vadd.f32 %v1396_v3, %v2900_v63 }
 0x3a8   : > { %1511 = vst [vmem:[%s2904_s30 + $0x108] sm:$0xff] %v1495_v1 }
 0x3a9   : > { %1529 = vst [vmem:[%s2904_s30 + $0x140] sm:$0xff] %v1348_v4  ;;  %v1433_v7 = vmul.f32 0.5, %v1397_v5 }
 0x3aa   : > { %1545 = vst [vmem:[%s2904_s30 + $0x148] sm:$0xff] %v1397_v5 }
 0x3ab   : > { %v2194_v29 = vpop.eup %2193  ;;  %v1462_v8 = vmul.f32 1.442695, %v1433_v7 }
 0x3ac   : > { %v1480_v9 = vmul.f32 %v2194_v29, %v1416_v6 }
 0x3ad   : > { %2195 = vpow2.f32 %v1462_v8 }
 0x3ae   : > { %v1496_v10 = vadd.f32 %v1480_v9, %v1346_v56  ;;  %v1350_v11 = vpop.f32.mrf.mxu0  ;;  %v1399_v12 = vpop.f32.mrf.mxu1 }
 0x3af   : > { %v1351_v13 = vadd.f32 %v1350_v11, %v2898_v62  ;;  %v1400_v14 = vadd.f32 %v1399_v12, %v2900_v63 }
 0x3b0   : > { %1512 = vst [vmem:[%s2904_s30 + $0x120] sm:$0xff] %v1496_v10 }
 0x3b1   : > { %1530 = vst [vmem:[%s2904_s30 + $0x158] sm:$0xff] %v1351_v13  ;;  %v1434_v16 = vmul.f32 0.5, %v1400_v14 }
 0x3b2   : > { %1546 = vst [vmem:[%s2904_s30 + $0x160] sm:$0xff] %v1400_v14 }
 0x3b3   : > { %v2196_v17 = vpop.eup %2195  ;;  %v1464_v18 = vmul.f32 1.442695, %v1434_v16 }
 0x3b4   : > { %v1481_v19 = vmul.f32 %v2196_v17, %v1417_v15 }
 0x3b5   : > { %2197 = vpow2.f32 %v1464_v18 }
 0x3b6   : > { %v1497_v20 = vadd.f32 %v1481_v19, %v1348_v4  ;;  %v1352_v21 = vpop.f32.mrf.mxu0  ;;  %v1401_v22 = vpop.f32.mrf.mxu1 }
 0x3b7   : > { %v1353_v23 = vadd.f32 %v1352_v21, %v2898_v62  ;;  %v1402_v24 = vadd.f32 %v1401_v22, %v2900_v63  ;;  %v1419_v62 = vld [vmem:[%s2799_s25 + $0x78] sm:$0xff]  ;;  %s2461_s25 = scalar_lea.hbm %s3046_s12, 768 }
 0x3b8   : > { %1513 = vst [vmem:[%s2904_s30 + $0x138] sm:$0xff] %v1497_v20  ;;  %p2463_p9 = scmp.lt.s32.totalorder %s2461_s25, %s2457_s29 }
 0x3b9   : > { %1531 = vst [vmem:[%s2904_s30 + $0x170] sm:$0xff] %v1353_v23  ;;  %v1435_v28 = vmul.f32 0.5, %v1402_v24 }
 0x3ba   : > { %1547 = vst [vmem:[%s2904_s30 + $0x178] sm:$0xff] %v1402_v24  ;;  %p2464_p5 = por %p2463_p9, %p2462_p7 }
 0x3bb   : > { %v2198_v30 = vpop.eup %2197  ;;  %v1466_v31 = vmul.f32 1.442695, %v1435_v28 }
 0x3bc   : > { %v1482_v32 = vmul.f32 %v2198_v30, %v1418_v26  ;;  %p2465_p8 = pnand %p2464_p5, %p2460_p12 }
 0x3bd   : > { %2199 = vpow2.f32 %v1466_v31 }
 0x3be   : > { %v1498_v33 = vadd.f32 %v1482_v32, %v1351_v13 }
 0x3c0   : > { %1514 = vst [vmem:[%s2904_s30 + $0x150] sm:$0xff] %v1498_v33 }
 0x3c3   : > { %v2200_v63 = vpop.eup %2199 }
 0x3c4   : > { %v1483_v34 = vmul.f32 %v2200_v63, %v1419_v62 }
 0x3c6   : > { %v1499_v27 = vadd.f32 %v1483_v34, %v1353_v23 }
 0x3c8   : > { %1515 = vst [vmem:[%s2904_s30 + $0x168] sm:$0xff] %v1499_v27 }
 0x3c9   : > { %2468 = shalt.err (!%p2465_p8)
}
 0x3ca   : > { %s2535_s15 = smov 384   ;;  %s2536_s18 = smov 24  }
 0x3cb   : > { %2075 = dma.vmem_to_hbm [thread:$0]  (%p2716_p4), %s1563_s27, 6144, %s1565_s19, %s1549_s3, %s2535_s15, %s2535_s15, %s2536_s18  }
 0x3cc PF: > { %s3084_s26 = sld [smem:[#allocation23_spill]]  ;;  %p3086_p10 = scmp.ge.s32.totalorder %s2523_s24, 2 }
 0x3ce   : > { %p2104_p13 = pnand %p3086_p10, %p2720_p6 }
 0x3d0   : > { %p2105_p11 = pneg %p2104_p13 }
 0x3d2   : > { %s1579_s9 = sand.u32 1, %s3084_s26  }
 0x3d3   : > { %s1580_s5 = scalar_lea.sflag [#allocation4], %s1579_s9 }
 0x3d4   : > { %2506 = dma.done.wait (%p2105_p11), %s1580_s5, 6144  }
 0x3d5   : > { %2508 = vsyncadd (%p2105_p11), %s1580_s5, 4294961152  ;;  %s3087_s24 = sld [smem:[#allocation25_spill]]  ;;  %s3090_s21 = smov %s2515_s22 }
 0x3d6   : > { %s3088_s30 = sld [smem:[#allocation24_spill]] }
 0x3d7   : > { %s3089_s23 = sld [smem:[#allocation26_spill]] }
 0x3db   : > { %p31_p0 = scmp.ge.s32.totalorder %s3087_s24, 4  }
 0x3dc   : > { %s3091_s22 = smov %s3088_s30 }
 0x3dd   :  { %33 = sbr.rel (!%p31_p0) target bundleno = 17 (0x11), region = 150 }
 0x3e2   :  { %1586 = vsyncpa [#allocation3], 1 }
 0x3e3   :  { %1588 = vsyncpa [#allocation3 + $0x1], 1 }
 0x3e4   :  { %1589 = vsyncpa [#allocation6], 1 }
 0x3e5   :  { %1590 = vsyncpa [#allocation9], 1 }
 0x3e6   :  { %1591 = vsyncpa [#allocation12], 1 }
 0x3e7   :  { %1592 = vsyncpa [#allocation15], 1 }
 0x3e8   :  { %1594 = vsyncpa [#allocation15 + $0x1], 1 }
 0x3e9   :  { %1595 = vsyncpa [#allocation4], 1 }
 0x3ea   :  { %1597 = vsyncpa [#allocation4 + $0x1], 1 }

</bundles_post_ra>
